<compile_context>
chip_gen: v5e
topology: v5e:2x2
jax: 0.10.0
libtpu: 0.0.40
codegen_flags: <defaults>
</compile_context>

<pallas_src>
import functools
import math

import jax
import jax.numpy as jnp
from jax.experimental import pallas as pl
from jax.experimental.pallas import tpu as pltpu

LN_EPS = 1e-5  # torch.nn.LayerNorm default


def _layernorm(x, gamma, beta):
    mu = jnp.mean(x, axis=-1, keepdims=True)
    xc = x - mu
    var = jnp.mean(xc * xc, axis=-1, keepdims=True)
    return xc * jax.lax.rsqrt(var + LN_EPS) * gamma + beta


def slot_attention_kernel(
    # per-batch tiles (leading batch dim squeezed away by the BlockSpec)
    inputs_ref,     # (N, Din)
    slots0_ref,     # (S, D)
    # resident parameters
    ln_in_g_ref, ln_in_b_ref,        # (1, Din)
    w_kv_ref,                        # (Din, 2D)  [to_k | to_v]
    w_q_ref,                         # (D, D)
    ln_sl_g_ref, ln_sl_b_ref,        # (1, D)
    w_i3_ref, w_h3_ref,              # (D, 3D)    GRU input/hidden gate blocks [r|z|n]
    b_i3_ref, b_h3_ref,              # (1, 3D)
    ln_ff_g_ref, ln_ff_b_ref,        # (1, D)
    w_mlp1_ref, b_mlp1_ref,          # (D, H), (1, H)
    w_mlp2_ref, b_mlp2_ref,          # (H, D), (1, D)
    # outputs
    slots_out_ref,  # (S, D)
    attn_out_ref,   # (S, N)
    *, iters, scale, eps, slot_dim,
):
    f32 = jnp.float32
    D = slot_dim

    # ---- hoisted parameter loads (read once, reused across the unrolled
    # iteration loop; avoids redundant VMEM loads per iteration) -------------
    ln_in_g, ln_in_b = ln_in_g_ref[...], ln_in_b_ref[...]
    w_kv = w_kv_ref[...]
    w_q = w_q_ref[...]
    ln_sl_g, ln_sl_b = ln_sl_g_ref[...], ln_sl_b_ref[...]
    w_i3, w_h3 = w_i3_ref[...], w_h3_ref[...]
    b_i3, b_h3 = b_i3_ref[...], b_h3_ref[...]
    ln_ff_g, ln_ff_b = ln_ff_g_ref[...], ln_ff_b_ref[...]
    w_mlp1, b_mlp1 = w_mlp1_ref[...], b_mlp1_ref[...]
    w_mlp2, b_mlp2 = w_mlp2_ref[...], b_mlp2_ref[...]

    # ---- input projection (once per batch element) -------------------------
    x = _layernorm(inputs_ref[...], ln_in_g, ln_in_b)                    # (N, Din)
    kv = jnp.dot(x, w_kv, preferred_element_type=f32)                    # (N, 2D)
    k = kv[:, :D]                                                        # (N, D)
    v = kv[:, D:]                                                        # (N, D)

    slots = slots0_ref[...]                                              # (S, D)
    attn_vis = jnp.zeros(attn_out_ref.shape, f32)

    # ---- slot-attention iterations (static unroll; iters is small) ---------
    for _ in range(iters):
        slots_prev = slots

        sn = _layernorm(slots, ln_sl_g, ln_sl_b)
        q = jnp.dot(sn, w_q, preferred_element_type=f32)                 # (S, D)

        # dots[i, j] = sum_d q[i, d] * k[j, d]
        dots = jax.lax.dot_general(
            q, k, (((1,), (1,)), ((), ())),
            preferred_element_type=f32) * scale                          # (S, N)

        # softmax over the slot axis (torch dim=1)
        m = jnp.max(dots, axis=0, keepdims=True)
        e = jnp.exp(dots - m)
        attn_vis = e / jnp.sum(e, axis=0, keepdims=True)                 # returned
        attn = attn_vis + eps
        attn = attn / jnp.sum(attn, axis=1, keepdims=True)               # (S, N)

        upd = jnp.dot(attn, v, preferred_element_type=f32)               # (S, D)

        # ---- GRUCell(updates, slots_prev): 2 fused matmuls ------------------
        gi = jnp.dot(upd, w_i3, preferred_element_type=f32) + b_i3       # (S, 3D)
        gh = jnp.dot(slots_prev, w_h3, preferred_element_type=f32) + b_h3
        r = jax.nn.sigmoid(gi[:, :D] + gh[:, :D])
        z = jax.nn.sigmoid(gi[:, D:2 * D] + gh[:, D:2 * D])
        n_cand = jnp.tanh(gi[:, 2 * D:] + r * gh[:, 2 * D:])
        h_new = (1.0 - z) * n_cand + z * slots_prev                      # (S, D)

        # ---- residual MLP ----------------------------------------------------
        pf = _layernorm(h_new, ln_ff_g, ln_ff_b)
        hid = jnp.maximum(
            jnp.dot(pf, w_mlp1, preferred_element_type=f32) + b_mlp1, 0.0)  # (S, H)
        ff = jnp.dot(hid, w_mlp2, preferred_element_type=f32) + b_mlp2
        slots = h_new + ff

    slots_out_ref[...] = slots.astype(slots_out_ref.dtype)
    attn_out_ref[...] = attn_vis.astype(attn_out_ref.dtype)


def _resident_spec(arr):
    """Full-array block; constant index_map keeps it VMEM-resident across the grid."""
    ndim = arr.ndim
    return pl.BlockSpec(arr.shape, lambda i, _nd=ndim: (0,) * _nd)


def slot_attention(inputs, slots_init, params, *, num_iters, eps=1e-8):
    """inputs: (B, N, Din) f32, slots_init: (B, S, D) f32 -> (slots, attn)."""
    assert num_iters >= 1
    B, N, Din = inputs.shape
    _, S, D = slots_init.shape
    H = params["w_mlp1"].shape[1]
    scale = float(D) ** -0.5

    # Host-side (one-time) weight fusion: widens the MXU matmuls from D-lane
    # tiles to 2D / 3D lanes and cuts the per-iteration push count.
    w_kv = jnp.concatenate([params["w_k"], params["w_v"]], axis=1)            # (Din, 2D)
    w_i3 = jnp.concatenate([params["w_ir"], params["w_iz"], params["w_in"]], axis=1)
    w_h3 = jnp.concatenate([params["w_hr"], params["w_hz"], params["w_hn"]], axis=1)
    b_i3 = jnp.concatenate([params["b_ir"], params["b_iz"], params["b_in"]], axis=1)
    b_h3 = jnp.concatenate([params["b_hr"], params["b_hz"], params["b_hn"]], axis=1)

    weights = [
        params["ln_in_g"], params["ln_in_b"],
        w_kv, params["w_q"],
        params["ln_sl_g"], params["ln_sl_b"],
        w_i3, w_h3, b_i3, b_h3,
        params["ln_ff_g"], params["ln_ff_b"],
        params["w_mlp1"], params["b_mlp1"],
        params["w_mlp2"], params["b_mlp2"],
    ]

    in_specs = [
        pl.BlockSpec((None, N, Din), lambda i: (i, 0, 0)),   # one batch per step
        pl.BlockSpec((None, S, D), lambda i: (i, 0, 0)),
    ] + [_resident_spec(w) for w in weights]

    out_specs = [
        pl.BlockSpec((None, S, D), lambda i: (i, 0, 0)),
        pl.BlockSpec((None, S, N), lambda i: (i, 0, 0)),
    ]
    out_shape = (
        jax.ShapeDtypeStruct((B, S, D), jnp.float32),
        jax.ShapeDtypeStruct((B, S, N), jnp.float32),
    )

    # advisory cost estimate (matmul-dominated, mem-light)
    flops = B * (
        2 * N * Din * 2 * D                       # fused k/v projection
        + num_iters * (
            2 * S * D * D                         # q projection
            + 2 * 2 * S * N * D                   # dots + updates
            + 2 * 2 * S * D * 3 * D               # fused GRU matmuls
            + 2 * 2 * S * D * H                   # MLP
        )
    )
    transcendentals = B * num_iters * (S * N + 3 * S * D)
    bytes_accessed = 4 * (
        B * N * Din + 2 * B * S * D + B * S * N
        + sum(math.prod(w.shape) for w in weights)
    )
    cost = pl.CostEstimate(
        flops=int(flops),
        transcendentals=int(transcendentals),
        bytes_accessed=int(bytes_accessed),
    )

    kernel = functools.partial(
        slot_attention_kernel, iters=num_iters, scale=scale, eps=eps, slot_dim=D)

    slots_out, attn_out = pl.pallas_call(
        kernel,
        out_shape=out_shape,
        grid_spec=pltpu.PrefetchScalarGridSpec(
            num_scalar_prefetch=0,
            grid=(B,),
            in_specs=in_specs,
            out_specs=out_specs,
        ),
        compiler_params=pltpu.CompilerParams(
            dimension_semantics=("parallel",)),
        cost_estimate=cost,
    )(inputs, slots_init, *weights)

    return slots_out, attn_out


def init_params(key, in_channels, slot_dim, hidden_dim=128):
    """Synthetic parameters; shapes match the torch module (weights stored (in, out))."""
    hidden_dim = max(slot_dim, hidden_dim)
    D = slot_dim
    keys = jax.random.split(key, 13)

    def xavier(k, fan_in, fan_out):
        limit = math.sqrt(6.0 / (fan_in + fan_out))
        return jax.random.uniform(k, (fan_in, fan_out), jnp.float32, -limit, limit)

    params = {
        "ln_in_g": jnp.ones((1, in_channels), jnp.float32),
        "ln_in_b": jnp.zeros((1, in_channels), jnp.float32),
        "w_k": xavier(keys[0], in_channels, D),
        "w_v": xavier(keys[1], in_channels, D),
        "w_q": xavier(keys[2], D, D),
        "ln_sl_g": jnp.ones((1, D), jnp.float32),
        "ln_sl_b": jnp.zeros((1, D), jnp.float32),
        # GRU weights: transposed per-gate (r, z, n) chunks of torch weight_ih / weight_hh
        "w_ir": xavier(keys[3], D, D), "w_iz": xavier(keys[4], D, D),
        "w_in": xavier(keys[5], D, D),
        "w_hr": xavier(keys[6], D, D), "w_hz": xavier(keys[7], D, D),
        "w_hn": xavier(keys[8], D, D),
        # torch init zeroes the GRU biases
        "b_ir": jnp.zeros((1, D), jnp.float32), "b_iz": jnp.zeros((1, D), jnp.float32),
        "b_in": jnp.zeros((1, D), jnp.float32),
        "b_hr": jnp.zeros((1, D), jnp.float32), "b_hz": jnp.zeros((1, D), jnp.float32),
        "b_hn": jnp.zeros((1, D), jnp.float32),
        "ln_ff_g": jnp.ones((1, D), jnp.float32),
        "ln_ff_b": jnp.zeros((1, D), jnp.float32),
        "w_mlp1": xavier(keys[9], D, hidden_dim),
        "b_mlp1": jnp.zeros((1, hidden_dim), jnp.float32),
        "w_mlp2": xavier(keys[10], hidden_dim, D),
        "b_mlp2": jnp.zeros((1, D), jnp.float32),
    }
    limit = math.sqrt(6.0 / (1 + D))
    params["slots_mu"] = jax.random.uniform(keys[11], (1, 1, D), jnp.float32, -limit, limit)
    params["slots_log_sigma"] = jax.random.uniform(keys[12], (1, 1, D), jnp.float32, -limit, limit)
    return params


def _reference(inputs, slots_init, p, *, num_iters, eps=1e-8):
    """Plain-JAX reference for sanity checking the kernel."""
    D = slots_init.shape[-1]
    scale = float(D) ** -0.5
    x = _layernorm(inputs, p["ln_in_g"], p["ln_in_b"])
    k = x @ p["w_k"]
    v = x @ p["w_v"]
    slots = slots_init
    attn_vis = None
    for _ in range(num_iters):
        slots_prev = slots
        sn = _layernorm(slots, p["ln_sl_g"], p["ln_sl_b"])
        q = sn @ p["w_q"]
        dots = jnp.einsum("bid,bjd->bij", q, k) * scale
        attn_vis = jax.nn.softmax(dots, axis=1)
        attn = attn_vis + eps
        attn = attn / attn.sum(axis=-1, keepdims=True)
        upd = jnp.einsum("bjd,bij->bid", v, attn)
        r = jax.nn.sigmoid(upd @ p["w_ir"] + p["b_ir"]
                           + slots_prev @ p["w_hr"] + p["b_hr"])
        z = jax.nn.sigmoid(upd @ p["w_iz"] + p["b_iz"]
                           + slots_prev @ p["w_hz"] + p["b_hz"])
        nc = jnp.tanh(upd @ p["w_in"] + p["b_in"]
                      + r * (slots_prev @ p["w_hn"] + p["b_hn"]))
        h_new = (1.0 - z) * nc + z * slots_prev
        pf = _layernorm(h_new, p["ln_ff_g"], p["ln_ff_b"])
        hid = jnp.maximum(pf @ p["w_mlp1"] + p["b_mlp1"], 0.0)
        slots = h_new + hid @ p["w_mlp2"] + p["b_mlp2"]
    return slots, attn_vis


if __name__ == "__main__":
    key = jax.random.PRNGKey(0)
    k_in, k_par, k_noise = jax.random.split(key, 3)

    # small shapes: batch=2, n=16 tokens, in_channels=32, slot_dim=32, 4 slots, 3 iters
    B, N, IN_CH = 2, 16, 32
    SLOT_DIM, NUM_SLOTS, ITERS = 32, 4, 3

    inputs = jax.random.normal(k_in, (B, N, IN_CH), jnp.float32)
    params = init_params(k_par, IN_CH, SLOT_DIM, hidden_dim=128)

    # TODO(synk): torch.normal(mu, sigma) slot init uses torch's stateful RNG;
    # sampled host-side with jax.random (same distribution).
    noise = jax.random.normal(k_noise, (B, NUM_SLOTS, SLOT_DIM), jnp.float32)
    slots_init = params["slots_mu"] + jnp.exp(params["slots_log_sigma"]) * noise

    slots, attn = slot_attention(inputs, slots_init, params, num_iters=ITERS)
    slots = jax.block_until_ready(slots)
    attn = jax.block_until_ready(attn)

    ref_slots, ref_attn = _reference(inputs, slots_init, params, num_iters=ITERS)

    assert slots.shape == (B, NUM_SLOTS, SLOT_DIM), slots.shape
    assert attn.shape == (B, NUM_SLOTS, N), attn.shape
    assert jnp.allclose(slots, ref_slots, atol=1e-3, rtol=1e-3), (
        float(jnp.max(jnp.abs(slots - ref_slots))))
    assert jnp.allclose(attn, ref_attn, atol=1e-3, rtol=1e-3), (
        float(jnp.max(jnp.abs(attn - ref_attn))))
    print("KERNEL_OK")
</pallas_src>

<mosaic_0001>
module attributes {stable_mosaic.version = 11 : i64} {
  func.func @slot_attention_kernel(%arg0: i32, %arg1: memref<1x16x32xf32, #tpu.memory_space<vmem>>, %arg2: memref<1x4x32xf32, #tpu.memory_space<vmem>>, %arg3: memref<1x32xf32, #tpu.memory_space<vmem>>, %arg4: memref<1x32xf32, #tpu.memory_space<vmem>>, %arg5: memref<32x64xf32, #tpu.memory_space<vmem>>, %arg6: memref<32x32xf32, #tpu.memory_space<vmem>>, %arg7: memref<1x32xf32, #tpu.memory_space<vmem>>, %arg8: memref<1x32xf32, #tpu.memory_space<vmem>>, %arg9: memref<32x96xf32, #tpu.memory_space<vmem>>, %arg10: memref<32x96xf32, #tpu.memory_space<vmem>>, %arg11: memref<1x96xf32, #tpu.memory_space<vmem>>, %arg12: memref<1x96xf32, #tpu.memory_space<vmem>>, %arg13: memref<1x32xf32, #tpu.memory_space<vmem>>, %arg14: memref<1x32xf32, #tpu.memory_space<vmem>>, %arg15: memref<32x128xf32, #tpu.memory_space<vmem>>, %arg16: memref<1x128xf32, #tpu.memory_space<vmem>>, %arg17: memref<128x32xf32, #tpu.memory_space<vmem>>, %arg18: memref<1x32xf32, #tpu.memory_space<vmem>>, %arg19: memref<1x4x32xf32, #tpu.memory_space<vmem>>, %arg20: memref<1x4x16xf32, #tpu.memory_space<vmem>>) attributes {dimension_semantics = [#tpu.dimension_semantics<parallel>], iteration_bounds = array<i64: 2>, scalar_prefetch = 0 : i64, scratch_operands = 0 : i64, tpu.core_type = #tpu.core_type<tc>, window_params = [{transform_indices = @transform_0, window_bounds = array<i64: 1, 16, 32>}, {transform_indices = @transform_1, window_bounds = array<i64: 1, 4, 32>}, {pipeline_mode = #tpu.pipeline_mode<synchronous>, transform_indices = @transform_2, window_bounds = array<i64: 1, 32>}, {pipeline_mode = #tpu.pipeline_mode<synchronous>, transform_indices = @transform_3, window_bounds = array<i64: 1, 32>}, {pipeline_mode = #tpu.pipeline_mode<synchronous>, transform_indices = @transform_4, window_bounds = array<i64: 32, 64>}, {pipeline_mode = #tpu.pipeline_mode<synchronous>, transform_indices = @transform_5, window_bounds = array<i64: 32, 32>}, {pipeline_mode = #tpu.pipeline_mode<synchronous>, transform_indices = @transform_6, window_bounds = array<i64: 1, 32>}, {pipeline_mode = #tpu.pipeline_mode<synchronous>, transform_indices = @transform_7, window_bounds = array<i64: 1, 32>}, {pipeline_mode = #tpu.pipeline_mode<synchronous>, transform_indices = @transform_8, window_bounds = array<i64: 32, 96>}, {pipeline_mode = #tpu.pipeline_mode<synchronous>, transform_indices = @transform_9, window_bounds = array<i64: 32, 96>}, {pipeline_mode = #tpu.pipeline_mode<synchronous>, transform_indices = @transform_10, window_bounds = array<i64: 1, 96>}, {pipeline_mode = #tpu.pipeline_mode<synchronous>, transform_indices = @transform_11, window_bounds = array<i64: 1, 96>}, {pipeline_mode = #tpu.pipeline_mode<synchronous>, transform_indices = @transform_12, window_bounds = array<i64: 1, 32>}, {pipeline_mode = #tpu.pipeline_mode<synchronous>, transform_indices = @transform_13, window_bounds = array<i64: 1, 32>}, {pipeline_mode = #tpu.pipeline_mode<synchronous>, transform_indices = @transform_14, window_bounds = array<i64: 32, 128>}, {pipeline_mode = #tpu.pipeline_mode<synchronous>, transform_indices = @transform_15, window_bounds = array<i64: 1, 128>}, {pipeline_mode = #tpu.pipeline_mode<synchronous>, transform_indices = @transform_16, window_bounds = array<i64: 128, 32>}, {pipeline_mode = #tpu.pipeline_mode<synchronous>, transform_indices = @transform_17, window_bounds = array<i64: 1, 32>}, {transform_indices = @transform_18, window_bounds = array<i64: 1, 4, 32>}, {transform_indices = @transform_19, window_bounds = array<i64: 1, 4, 16>}]} {
    %c0 = arith.constant 0 : index
    %c0_0 = arith.constant 0 : index
    %0 = vector.load %arg3[%c0, %c0_0] : memref<1x32xf32, #tpu.memory_space<vmem>>, vector<1x32xf32>
    %c0_1 = arith.constant 0 : index
    %c0_2 = arith.constant 0 : index
    %1 = vector.load %arg4[%c0_1, %c0_2] : memref<1x32xf32, #tpu.memory_space<vmem>>, vector<1x32xf32>
    %c0_3 = arith.constant 0 : index
    %c0_4 = arith.constant 0 : index
    %2 = vector.load %arg5[%c0_3, %c0_4] : memref<32x64xf32, #tpu.memory_space<vmem>>, vector<32x64xf32>
    %c0_5 = arith.constant 0 : index
    %c0_6 = arith.constant 0 : index
    %3 = vector.load %arg6[%c0_5, %c0_6] : memref<32x32xf32, #tpu.memory_space<vmem>>, vector<32x32xf32>
    %c0_7 = arith.constant 0 : index
    %c0_8 = arith.constant 0 : index
    %4 = vector.load %arg7[%c0_7, %c0_8] : memref<1x32xf32, #tpu.memory_space<vmem>>, vector<1x32xf32>
    %c0_9 = arith.constant 0 : index
    %c0_10 = arith.constant 0 : index
    %5 = vector.load %arg8[%c0_9, %c0_10] : memref<1x32xf32, #tpu.memory_space<vmem>>, vector<1x32xf32>
    %c0_11 = arith.constant 0 : index
    %c0_12 = arith.constant 0 : index
    %6 = vector.load %arg9[%c0_11, %c0_12] : memref<32x96xf32, #tpu.memory_space<vmem>>, vector<32x96xf32>
    %c0_13 = arith.constant 0 : index
    %c0_14 = arith.constant 0 : index
    %7 = vector.load %arg10[%c0_13, %c0_14] : memref<32x96xf32, #tpu.memory_space<vmem>>, vector<32x96xf32>
    %c0_15 = arith.constant 0 : index
    %c0_16 = arith.constant 0 : index
    %8 = vector.load %arg11[%c0_15, %c0_16] : memref<1x96xf32, #tpu.memory_space<vmem>>, vector<1x96xf32>
    %c0_17 = arith.constant 0 : index
    %c0_18 = arith.constant 0 : index
    %9 = vector.load %arg12[%c0_17, %c0_18] : memref<1x96xf32, #tpu.memory_space<vmem>>, vector<1x96xf32>
    %c0_19 = arith.constant 0 : index
    %c0_20 = arith.constant 0 : index
    %10 = vector.load %arg13[%c0_19, %c0_20] : memref<1x32xf32, #tpu.memory_space<vmem>>, vector<1x32xf32>
    %c0_21 = arith.constant 0 : index
    %c0_22 = arith.constant 0 : index
    %11 = vector.load %arg14[%c0_21, %c0_22] : memref<1x32xf32, #tpu.memory_space<vmem>>, vector<1x32xf32>
    %c0_23 = arith.constant 0 : index
    %c0_24 = arith.constant 0 : index
    %12 = vector.load %arg15[%c0_23, %c0_24] : memref<32x128xf32, #tpu.memory_space<vmem>>, vector<32x128xf32>
    %c0_25 = arith.constant 0 : index
    %c0_26 = arith.constant 0 : index
    %13 = vector.load %arg16[%c0_25, %c0_26] : memref<1x128xf32, #tpu.memory_space<vmem>>, vector<1x128xf32>
    %c0_27 = arith.constant 0 : index
    %c0_28 = arith.constant 0 : index
    %14 = vector.load %arg17[%c0_27, %c0_28] : memref<128x32xf32, #tpu.memory_space<vmem>>, vector<128x32xf32>
    %c0_29 = arith.constant 0 : index
    %c0_30 = arith.constant 0 : index
    %15 = vector.load %arg18[%c0_29, %c0_30] : memref<1x32xf32, #tpu.memory_space<vmem>>, vector<1x32xf32>
    %c0_31 = arith.constant 0 : index
    %c0_32 = arith.constant 0 : index
    %c0_33 = arith.constant 0 : index
    %16 = vector.load %arg1[%c0_31, %c0_32, %c0_33] : memref<1x16x32xf32, #tpu.memory_space<vmem>>, vector<1x16x32xf32>
    %17 = vector.shape_cast %16 : vector<1x16x32xf32> to vector<16x32xf32>
    %cst = arith.constant dense<0.000000e+00> : vector<16xf32>
    %18 = vector.multi_reduction <add>, %17, %cst [1] : vector<16x32xf32> to vector<16xf32>
    %19 = vector.shape_cast %18 : vector<16xf32> to vector<16x1xf32>
    %cst_34 = arith.constant 3.200000e+01 : f32
    %20 = vector.broadcast %cst_34 : f32 to vector<16x1xf32>
    %21 = arith.divf %19, %20 : vector<16x1xf32>
    %22 = vector.broadcast %21 : vector<16x1xf32> to vector<16x32xf32>
    %23 = arith.subf %17, %22 : vector<16x32xf32>
    %24 = arith.mulf %23, %23 : vector<16x32xf32>
    %cst_35 = arith.constant dense<0.000000e+00> : vector<16xf32>
    %25 = vector.multi_reduction <add>, %24, %cst_35 [1] : vector<16x32xf32> to vector<16xf32>
    %26 = vector.shape_cast %25 : vector<16xf32> to vector<16x1xf32>
    %cst_36 = arith.constant 3.200000e+01 : f32
    %27 = vector.broadcast %cst_36 : f32 to vector<16x1xf32>
    %28 = arith.divf %26, %27 : vector<16x1xf32>
    %cst_37 = arith.constant 9.99999974E-6 : f32
    %29 = vector.broadcast %cst_37 : f32 to vector<16x1xf32>
    %30 = arith.addf %28, %29 : vector<16x1xf32>
    %31 = math.rsqrt %30 : vector<16x1xf32>
    %32 = vector.broadcast %31 : vector<16x1xf32> to vector<16x32xf32>
    %33 = arith.mulf %23, %32 : vector<16x32xf32>
    %34 = vector.broadcast %0 : vector<1x32xf32> to vector<16x32xf32>
    %35 = arith.mulf %33, %34 : vector<16x32xf32>
    %36 = vector.broadcast %1 : vector<1x32xf32> to vector<16x32xf32>
    %37 = arith.addf %35, %36 : vector<16x32xf32>
    %cst_38 = arith.constant dense<0.000000e+00> : vector<16x64xf32>
    %38 = tpu.matmul %37, %2, %cst_38 {dimension_numbers = #tpu.dot_dimension_numbers<[1], [0], [0], [1], [0, 0, 1, 1], [], []>} : vector<16x32xf32>, vector<32x64xf32>, vector<16x64xf32> -> vector<16x64xf32>
    %39 = vector.extract_strided_slice %38 {offsets = [0, 0], sizes = [16, 32], strides = [1, 1]} : vector<16x64xf32> to vector<16x32xf32>
    %40 = vector.extract_strided_slice %38 {offsets = [0, 32], sizes = [16, 32], strides = [1, 1]} : vector<16x64xf32> to vector<16x32xf32>
    %c0_39 = arith.constant 0 : index
    %c0_40 = arith.constant 0 : index
    %c0_41 = arith.constant 0 : index
    %41 = vector.load %arg2[%c0_39, %c0_40, %c0_41] : memref<1x4x32xf32, #tpu.memory_space<vmem>>, vector<1x4x32xf32>
    %42 = vector.shape_cast %41 : vector<1x4x32xf32> to vector<4x32xf32>
    %cst_42 = arith.constant dense<0.000000e+00> : vector<4xf32>
    %43 = vector.multi_reduction <add>, %42, %cst_42 [1] : vector<4x32xf32> to vector<4xf32>
    %44 = vector.shape_cast %43 : vector<4xf32> to vector<4x1xf32>
    %cst_43 = arith.constant 3.200000e+01 : f32
    %45 = vector.broadcast %cst_43 : f32 to vector<4x1xf32>
    %46 = arith.divf %44, %45 : vector<4x1xf32>
    %47 = vector.broadcast %46 : vector<4x1xf32> to vector<4x32xf32>
    %48 = arith.subf %42, %47 : vector<4x32xf32>
    %49 = arith.mulf %48, %48 : vector<4x32xf32>
    %cst_44 = arith.constant dense<0.000000e+00> : vector<4xf32>
    %50 = vector.multi_reduction <add>, %49, %cst_44 [1] : vector<4x32xf32> to vector<4xf32>
    %51 = vector.shape_cast %50 : vector<4xf32> to vector<4x1xf32>
    %cst_45 = arith.constant 3.200000e+01 : f32
    %52 = vector.broadcast %cst_45 : f32 to vector<4x1xf32>
    %53 = arith.divf %51, %52 : vector<4x1xf32>
    %cst_46 = arith.constant 9.99999974E-6 : f32
    %54 = vector.broadcast %cst_46 : f32 to vector<4x1xf32>
    %55 = arith.addf %53, %54 : vector<4x1xf32>
    %56 = math.rsqrt %55 : vector<4x1xf32>
    %57 = vector.broadcast %56 : vector<4x1xf32> to vector<4x32xf32>
    %58 = arith.mulf %48, %57 : vector<4x32xf32>
    %59 = vector.broadcast %4 : vector<1x32xf32> to vector<4x32xf32>
    %60 = arith.mulf %58, %59 : vector<4x32xf32>
    %61 = vector.broadcast %5 : vector<1x32xf32> to vector<4x32xf32>
    %62 = arith.addf %60, %61 : vector<4x32xf32>
    %cst_47 = arith.constant dense<0.000000e+00> : vector<4x32xf32>
    %63 = tpu.matmul %62, %3, %cst_47 {dimension_numbers = #tpu.dot_dimension_numbers<[1], [0], [0], [1], [0, 0, 1, 1], [], []>} : vector<4x32xf32>, vector<32x32xf32>, vector<4x32xf32> -> vector<4x32xf32>
    %cst_48 = arith.constant dense<0.000000e+00> : vector<4x16xf32>
    %64 = tpu.matmul %63, %39, %cst_48 {dimension_numbers = #tpu.dot_dimension_numbers<[1], [1], [0], [0], [0, 0, 1, 0], [], []>} : vector<4x32xf32>, vector<16x32xf32>, vector<4x16xf32> -> vector<4x16xf32>
    %cst_49 = arith.constant 0.176776692 : f32
    %65 = vector.broadcast %cst_49 : f32 to vector<4x16xf32>
    %66 = arith.mulf %64, %65 : vector<4x16xf32>
    %cst_50 = arith.constant dense<0xFF800000> : vector<16xf32>
    %67 = vector.multi_reduction <maximumf>, %66, %cst_50 [0] : vector<4x16xf32> to vector<16xf32>
    %68 = vector.shape_cast %67 : vector<16xf32> to vector<1x16xf32>
    %69 = vector.broadcast %68 : vector<1x16xf32> to vector<4x16xf32>
    %70 = arith.subf %66, %69 : vector<4x16xf32>
    %71 = math.exp %70 : vector<4x16xf32>
    %cst_51 = arith.constant dense<0.000000e+00> : vector<16xf32>
    %72 = vector.multi_reduction <add>, %71, %cst_51 [0] : vector<4x16xf32> to vector<16xf32>
    %73 = vector.shape_cast %72 : vector<16xf32> to vector<1x16xf32>
    %74 = vector.broadcast %73 : vector<1x16xf32> to vector<4x16xf32>
    %75 = arith.divf %71, %74 : vector<4x16xf32>
    %cst_52 = arith.constant 9.99999993E-9 : f32
    %76 = vector.broadcast %cst_52 : f32 to vector<4x16xf32>
    %77 = arith.addf %75, %76 : vector<4x16xf32>
    %cst_53 = arith.constant dense<0.000000e+00> : vector<4xf32>
    %78 = vector.multi_reduction <add>, %77, %cst_53 [1] : vector<4x16xf32> to vector<4xf32>
    %79 = vector.shape_cast %78 : vector<4xf32> to vector<4x1xf32>
    %80 = vector.broadcast %79 : vector<4x1xf32> to vector<4x16xf32>
    %81 = arith.divf %77, %80 : vector<4x16xf32>
    %cst_54 = arith.constant dense<0.000000e+00> : vector<4x32xf32>
    %82 = tpu.matmul %81, %40, %cst_54 {dimension_numbers = #tpu.dot_dimension_numbers<[1], [0], [0], [1], [0, 0, 1, 1], [], []>} : vector<4x16xf32>, vector<16x32xf32>, vector<4x32xf32> -> vector<4x32xf32>
    %cst_55 = arith.constant dense<0.000000e+00> : vector<4x96xf32>
    %83 = tpu.matmul %82, %6, %cst_55 {dimension_numbers = #tpu.dot_dimension_numbers<[1], [0], [0], [1], [0, 0, 1, 1], [], []>} : vector<4x32xf32>, vector<32x96xf32>, vector<4x96xf32> -> vector<4x96xf32>
    %84 = vector.broadcast %8 : vector<1x96xf32> to vector<4x96xf32>
    %85 = arith.addf %83, %84 : vector<4x96xf32>
    %cst_56 = arith.constant dense<0.000000e+00> : vector<4x96xf32>
    %86 = tpu.matmul %42, %7, %cst_56 {dimension_numbers = #tpu.dot_dimension_numbers<[1], [0], [0], [1], [0, 0, 1, 1], [], []>} : vector<4x32xf32>, vector<32x96xf32>, vector<4x96xf32> -> vector<4x96xf32>
    %87 = vector.broadcast %9 : vector<1x96xf32> to vector<4x96xf32>
    %88 = arith.addf %86, %87 : vector<4x96xf32>
    %89 = vector.extract_strided_slice %85 {offsets = [0, 0], sizes = [4, 32], strides = [1, 1]} : vector<4x96xf32> to vector<4x32xf32>
    %90 = vector.extract_strided_slice %88 {offsets = [0, 0], sizes = [4, 32], strides = [1, 1]} : vector<4x96xf32> to vector<4x32xf32>
    %91 = arith.addf %89, %90 : vector<4x32xf32>
    %92 = arith.negf %91 : vector<4x32xf32>
    %93 = math.exp %92 : vector<4x32xf32>
    %cst_57 = arith.constant 1.000000e+00 : f32
    %94 = vector.broadcast %cst_57 : f32 to vector<4x32xf32>
    %95 = arith.addf %94, %93 : vector<4x32xf32>
    %96 = arith.divf %94, %95 : vector<4x32xf32>
    %97 = vector.extract_strided_slice %85 {offsets = [0, 32], sizes = [4, 32], strides = [1, 1]} : vector<4x96xf32> to vector<4x32xf32>
    %98 = vector.extract_strided_slice %88 {offsets = [0, 32], sizes = [4, 32], strides = [1, 1]} : vector<4x96xf32> to vector<4x32xf32>
    %99 = arith.addf %97, %98 : vector<4x32xf32>
    %100 = arith.negf %99 : vector<4x32xf32>
    %101 = math.exp %100 : vector<4x32xf32>
    %cst_58 = arith.constant 1.000000e+00 : f32
    %102 = vector.broadcast %cst_58 : f32 to vector<4x32xf32>
    %103 = arith.addf %102, %101 : vector<4x32xf32>
    %104 = arith.divf %102, %103 : vector<4x32xf32>
    %105 = vector.extract_strided_slice %85 {offsets = [0, 64], sizes = [4, 32], strides = [1, 1]} : vector<4x96xf32> to vector<4x32xf32>
    %106 = vector.extract_strided_slice %88 {offsets = [0, 64], sizes = [4, 32], strides = [1, 1]} : vector<4x96xf32> to vector<4x32xf32>
    %107 = arith.mulf %96, %106 : vector<4x32xf32>
    %108 = arith.addf %105, %107 : vector<4x32xf32>
    %109 = math.tanh %108 : vector<4x32xf32>
    %cst_59 = arith.constant 1.000000e+00 : f32
    %110 = vector.broadcast %cst_59 : f32 to vector<4x32xf32>
    %111 = arith.subf %110, %104 : vector<4x32xf32>
    %112 = arith.mulf %111, %109 : vector<4x32xf32>
    %113 = arith.mulf %104, %42 : vector<4x32xf32>
    %114 = arith.addf %112, %113 : vector<4x32xf32>
    %cst_60 = arith.constant dense<0.000000e+00> : vector<4xf32>
    %115 = vector.multi_reduction <add>, %114, %cst_60 [1] : vector<4x32xf32> to vector<4xf32>
    %116 = vector.shape_cast %115 : vector<4xf32> to vector<4x1xf32>
    %cst_61 = arith.constant 3.200000e+01 : f32
    %117 = vector.broadcast %cst_61 : f32 to vector<4x1xf32>
    %118 = arith.divf %116, %117 : vector<4x1xf32>
    %119 = vector.broadcast %118 : vector<4x1xf32> to vector<4x32xf32>
    %120 = arith.subf %114, %119 : vector<4x32xf32>
    %121 = arith.mulf %120, %120 : vector<4x32xf32>
    %cst_62 = arith.constant dense<0.000000e+00> : vector<4xf32>
    %122 = vector.multi_reduction <add>, %121, %cst_62 [1] : vector<4x32xf32> to vector<4xf32>
    %123 = vector.shape_cast %122 : vector<4xf32> to vector<4x1xf32>
    %cst_63 = arith.constant 3.200000e+01 : f32
    %124 = vector.broadcast %cst_63 : f32 to vector<4x1xf32>
    %125 = arith.divf %123, %124 : vector<4x1xf32>
    %cst_64 = arith.constant 9.99999974E-6 : f32
    %126 = vector.broadcast %cst_64 : f32 to vector<4x1xf32>
    %127 = arith.addf %125, %126 : vector<4x1xf32>
    %128 = math.rsqrt %127 : vector<4x1xf32>
    %129 = vector.broadcast %128 : vector<4x1xf32> to vector<4x32xf32>
    %130 = arith.mulf %120, %129 : vector<4x32xf32>
    %131 = vector.broadcast %10 : vector<1x32xf32> to vector<4x32xf32>
    %132 = arith.mulf %130, %131 : vector<4x32xf32>
    %133 = vector.broadcast %11 : vector<1x32xf32> to vector<4x32xf32>
    %134 = arith.addf %132, %133 : vector<4x32xf32>
    %cst_65 = arith.constant dense<0.000000e+00> : vector<4x128xf32>
    %135 = tpu.matmul %134, %12, %cst_65 {dimension_numbers = #tpu.dot_dimension_numbers<[1], [0], [0], [1], [0, 0, 1, 1], [], []>} : vector<4x32xf32>, vector<32x128xf32>, vector<4x128xf32> -> vector<4x128xf32>
    %136 = vector.broadcast %13 : vector<1x128xf32> to vector<4x128xf32>
    %137 = arith.addf %135, %136 : vector<4x128xf32>
    %cst_66 = arith.constant 0.000000e+00 : f32
    %138 = vector.broadcast %cst_66 : f32 to vector<4x128xf32>
    %139 = arith.maximumf %137, %138 : vector<4x128xf32>
    %cst_67 = arith.constant dense<0.000000e+00> : vector<4x32xf32>
    %140 = tpu.matmul %139, %14, %cst_67 {dimension_numbers = #tpu.dot_dimension_numbers<[1], [0], [0], [1], [0, 0, 1, 1], [], []>} : vector<4x128xf32>, vector<128x32xf32>, vector<4x32xf32> -> vector<4x32xf32>
    %141 = vector.broadcast %15 : vector<1x32xf32> to vector<4x32xf32>
    %142 = arith.addf %140, %141 : vector<4x32xf32>
    %143 = arith.addf %114, %142 : vector<4x32xf32>
    %cst_68 = arith.constant dense<0.000000e+00> : vector<4xf32>
    %144 = vector.multi_reduction <add>, %143, %cst_68 [1] : vector<4x32xf32> to vector<4xf32>
    %145 = vector.shape_cast %144 : vector<4xf32> to vector<4x1xf32>
    %cst_69 = arith.constant 3.200000e+01 : f32
    %146 = vector.broadcast %cst_69 : f32 to vector<4x1xf32>
    %147 = arith.divf %145, %146 : vector<4x1xf32>
    %148 = vector.broadcast %147 : vector<4x1xf32> to vector<4x32xf32>
    %149 = arith.subf %143, %148 : vector<4x32xf32>
    %150 = arith.mulf %149, %149 : vector<4x32xf32>
    %cst_70 = arith.constant dense<0.000000e+00> : vector<4xf32>
    %151 = vector.multi_reduction <add>, %150, %cst_70 [1] : vector<4x32xf32> to vector<4xf32>
    %152 = vector.shape_cast %151 : vector<4xf32> to vector<4x1xf32>
    %cst_71 = arith.constant 3.200000e+01 : f32
    %153 = vector.broadcast %cst_71 : f32 to vector<4x1xf32>
    %154 = arith.divf %152, %153 : vector<4x1xf32>
    %cst_72 = arith.constant 9.99999974E-6 : f32
    %155 = vector.broadcast %cst_72 : f32 to vector<4x1xf32>
    %156 = arith.addf %154, %155 : vector<4x1xf32>
    %157 = math.rsqrt %156 : vector<4x1xf32>
    %158 = vector.broadcast %157 : vector<4x1xf32> to vector<4x32xf32>
    %159 = arith.mulf %149, %158 : vector<4x32xf32>
    %160 = vector.broadcast %4 : vector<1x32xf32> to vector<4x32xf32>
    %161 = arith.mulf %159, %160 : vector<4x32xf32>
    %162 = vector.broadcast %5 : vector<1x32xf32> to vector<4x32xf32>
    %163 = arith.addf %161, %162 : vector<4x32xf32>
    %cst_73 = arith.constant dense<0.000000e+00> : vector<4x32xf32>
    %164 = tpu.matmul %163, %3, %cst_73 {dimension_numbers = #tpu.dot_dimension_numbers<[1], [0], [0], [1], [0, 0, 1, 1], [], []>} : vector<4x32xf32>, vector<32x32xf32>, vector<4x32xf32> -> vector<4x32xf32>
    %cst_74 = arith.constant dense<0.000000e+00> : vector<4x16xf32>
    %165 = tpu.matmul %164, %39, %cst_74 {dimension_numbers = #tpu.dot_dimension_numbers<[1], [1], [0], [0], [0, 0, 1, 0], [], []>} : vector<4x32xf32>, vector<16x32xf32>, vector<4x16xf32> -> vector<4x16xf32>
    %cst_75 = arith.constant 0.176776692 : f32
    %166 = vector.broadcast %cst_75 : f32 to vector<4x16xf32>
    %167 = arith.mulf %165, %166 : vector<4x16xf32>
    %cst_76 = arith.constant dense<0xFF800000> : vector<16xf32>
    %168 = vector.multi_reduction <maximumf>, %167, %cst_76 [0] : vector<4x16xf32> to vector<16xf32>
    %169 = vector.shape_cast %168 : vector<16xf32> to vector<1x16xf32>
    %170 = vector.broadcast %169 : vector<1x16xf32> to vector<4x16xf32>
    %171 = arith.subf %167, %170 : vector<4x16xf32>
    %172 = math.exp %171 : vector<4x16xf32>
    %cst_77 = arith.constant dense<0.000000e+00> : vector<16xf32>
    %173 = vector.multi_reduction <add>, %172, %cst_77 [0] : vector<4x16xf32> to vector<16xf32>
    %174 = vector.shape_cast %173 : vector<16xf32> to vector<1x16xf32>
    %175 = vector.broadcast %174 : vector<1x16xf32> to vector<4x16xf32>
    %176 = arith.divf %172, %175 : vector<4x16xf32>
    %cst_78 = arith.constant 9.99999993E-9 : f32
    %177 = vector.broadcast %cst_78 : f32 to vector<4x16xf32>
    %178 = arith.addf %176, %177 : vector<4x16xf32>
    %cst_79 = arith.constant dense<0.000000e+00> : vector<4xf32>
    %179 = vector.multi_reduction <add>, %178, %cst_79 [1] : vector<4x16xf32> to vector<4xf32>
    %180 = vector.shape_cast %179 : vector<4xf32> to vector<4x1xf32>
    %181 = vector.broadcast %180 : vector<4x1xf32> to vector<4x16xf32>
    %182 = arith.divf %178, %181 : vector<4x16xf32>
    %cst_80 = arith.constant dense<0.000000e+00> : vector<4x32xf32>
    %183 = tpu.matmul %182, %40, %cst_80 {dimension_numbers = #tpu.dot_dimension_numbers<[1], [0], [0], [1], [0, 0, 1, 1], [], []>} : vector<4x16xf32>, vector<16x32xf32>, vector<4x32xf32> -> vector<4x32xf32>
    %cst_81 = arith.constant dense<0.000000e+00> : vector<4x96xf32>
    %184 = tpu.matmul %183, %6, %cst_81 {dimension_numbers = #tpu.dot_dimension_numbers<[1], [0], [0], [1], [0, 0, 1, 1], [], []>} : vector<4x32xf32>, vector<32x96xf32>, vector<4x96xf32> -> vector<4x96xf32>
    %185 = vector.broadcast %8 : vector<1x96xf32> to vector<4x96xf32>
    %186 = arith.addf %184, %185 : vector<4x96xf32>
    %cst_82 = arith.constant dense<0.000000e+00> : vector<4x96xf32>
    %187 = tpu.matmul %143, %7, %cst_82 {dimension_numbers = #tpu.dot_dimension_numbers<[1], [0], [0], [1], [0, 0, 1, 1], [], []>} : vector<4x32xf32>, vector<32x96xf32>, vector<4x96xf32> -> vector<4x96xf32>
    %188 = vector.broadcast %9 : vector<1x96xf32> to vector<4x96xf32>
    %189 = arith.addf %187, %188 : vector<4x96xf32>
    %190 = vector.extract_strided_slice %186 {offsets = [0, 0], sizes = [4, 32], strides = [1, 1]} : vector<4x96xf32> to vector<4x32xf32>
    %191 = vector.extract_strided_slice %189 {offsets = [0, 0], sizes = [4, 32], strides = [1, 1]} : vector<4x96xf32> to vector<4x32xf32>
    %192 = arith.addf %190, %191 : vector<4x32xf32>
    %193 = arith.negf %192 : vector<4x32xf32>
    %194 = math.exp %193 : vector<4x32xf32>
    %cst_83 = arith.constant 1.000000e+00 : f32
    %195 = vector.broadcast %cst_83 : f32 to vector<4x32xf32>
    %196 = arith.addf %195, %194 : vector<4x32xf32>
    %197 = arith.divf %195, %196 : vector<4x32xf32>
    %198 = vector.extract_strided_slice %186 {offsets = [0, 32], sizes = [4, 32], strides = [1, 1]} : vector<4x96xf32> to vector<4x32xf32>
    %199 = vector.extract_strided_slice %189 {offsets = [0, 32], sizes = [4, 32], strides = [1, 1]} : vector<4x96xf32> to vector<4x32xf32>
    %200 = arith.addf %198, %199 : vector<4x32xf32>
    %201 = arith.negf %200 : vector<4x32xf32>
    %202 = math.exp %201 : vector<4x32xf32>
    %cst_84 = arith.constant 1.000000e+00 : f32
    %203 = vector.broadcast %cst_84 : f32 to vector<4x32xf32>
    %204 = arith.addf %203, %202 : vector<4x32xf32>
    %205 = arith.divf %203, %204 : vector<4x32xf32>
    %206 = vector.extract_strided_slice %186 {offsets = [0, 64], sizes = [4, 32], strides = [1, 1]} : vector<4x96xf32> to vector<4x32xf32>
    %207 = vector.extract_strided_slice %189 {offsets = [0, 64], sizes = [4, 32], strides = [1, 1]} : vector<4x96xf32> to vector<4x32xf32>
    %208 = arith.mulf %197, %207 : vector<4x32xf32>
    %209 = arith.addf %206, %208 : vector<4x32xf32>
    %210 = math.tanh %209 : vector<4x32xf32>
    %cst_85 = arith.constant 1.000000e+00 : f32
    %211 = vector.broadcast %cst_85 : f32 to vector<4x32xf32>
    %212 = arith.subf %211, %205 : vector<4x32xf32>
    %213 = arith.mulf %212, %210 : vector<4x32xf32>
    %214 = arith.mulf %205, %143 : vector<4x32xf32>
    %215 = arith.addf %213, %214 : vector<4x32xf32>
    %cst_86 = arith.constant dense<0.000000e+00> : vector<4xf32>
    %216 = vector.multi_reduction <add>, %215, %cst_86 [1] : vector<4x32xf32> to vector<4xf32>
    %217 = vector.shape_cast %216 : vector<4xf32> to vector<4x1xf32>
    %cst_87 = arith.constant 3.200000e+01 : f32
    %218 = vector.broadcast %cst_87 : f32 to vector<4x1xf32>
    %219 = arith.divf %217, %218 : vector<4x1xf32>
    %220 = vector.broadcast %219 : vector<4x1xf32> to vector<4x32xf32>
    %221 = arith.subf %215, %220 : vector<4x32xf32>
    %222 = arith.mulf %221, %221 : vector<4x32xf32>
    %cst_88 = arith.constant dense<0.000000e+00> : vector<4xf32>
    %223 = vector.multi_reduction <add>, %222, %cst_88 [1] : vector<4x32xf32> to vector<4xf32>
    %224 = vector.shape_cast %223 : vector<4xf32> to vector<4x1xf32>
    %cst_89 = arith.constant 3.200000e+01 : f32
    %225 = vector.broadcast %cst_89 : f32 to vector<4x1xf32>
    %226 = arith.divf %224, %225 : vector<4x1xf32>
    %cst_90 = arith.constant 9.99999974E-6 : f32
    %227 = vector.broadcast %cst_90 : f32 to vector<4x1xf32>
    %228 = arith.addf %226, %227 : vector<4x1xf32>
    %229 = math.rsqrt %228 : vector<4x1xf32>
    %230 = vector.broadcast %229 : vector<4x1xf32> to vector<4x32xf32>
    %231 = arith.mulf %221, %230 : vector<4x32xf32>
    %232 = vector.broadcast %10 : vector<1x32xf32> to vector<4x32xf32>
    %233 = arith.mulf %231, %232 : vector<4x32xf32>
    %234 = vector.broadcast %11 : vector<1x32xf32> to vector<4x32xf32>
    %235 = arith.addf %233, %234 : vector<4x32xf32>
    %cst_91 = arith.constant dense<0.000000e+00> : vector<4x128xf32>
    %236 = tpu.matmul %235, %12, %cst_91 {dimension_numbers = #tpu.dot_dimension_numbers<[1], [0], [0], [1], [0, 0, 1, 1], [], []>} : vector<4x32xf32>, vector<32x128xf32>, vector<4x128xf32> -> vector<4x128xf32>
    %237 = vector.broadcast %13 : vector<1x128xf32> to vector<4x128xf32>
    %238 = arith.addf %236, %237 : vector<4x128xf32>
    %cst_92 = arith.constant 0.000000e+00 : f32
    %239 = vector.broadcast %cst_92 : f32 to vector<4x128xf32>
    %240 = arith.maximumf %238, %239 : vector<4x128xf32>
    %cst_93 = arith.constant dense<0.000000e+00> : vector<4x32xf32>
    %241 = tpu.matmul %240, %14, %cst_93 {dimension_numbers = #tpu.dot_dimension_numbers<[1], [0], [0], [1], [0, 0, 1, 1], [], []>} : vector<4x128xf32>, vector<128x32xf32>, vector<4x32xf32> -> vector<4x32xf32>
    %242 = vector.broadcast %15 : vector<1x32xf32> to vector<4x32xf32>
    %243 = arith.addf %241, %242 : vector<4x32xf32>
    %244 = arith.addf %215, %243 : vector<4x32xf32>
    %cst_94 = arith.constant dense<0.000000e+00> : vector<4xf32>
    %245 = vector.multi_reduction <add>, %244, %cst_94 [1] : vector<4x32xf32> to vector<4xf32>
    %246 = vector.shape_cast %245 : vector<4xf32> to vector<4x1xf32>
    %cst_95 = arith.constant 3.200000e+01 : f32
    %247 = vector.broadcast %cst_95 : f32 to vector<4x1xf32>
    %248 = arith.divf %246, %247 : vector<4x1xf32>
    %249 = vector.broadcast %248 : vector<4x1xf32> to vector<4x32xf32>
    %250 = arith.subf %244, %249 : vector<4x32xf32>
    %251 = arith.mulf %250, %250 : vector<4x32xf32>
    %cst_96 = arith.constant dense<0.000000e+00> : vector<4xf32>
    %252 = vector.multi_reduction <add>, %251, %cst_96 [1] : vector<4x32xf32> to vector<4xf32>
    %253 = vector.shape_cast %252 : vector<4xf32> to vector<4x1xf32>
    %cst_97 = arith.constant 3.200000e+01 : f32
    %254 = vector.broadcast %cst_97 : f32 to vector<4x1xf32>
    %255 = arith.divf %253, %254 : vector<4x1xf32>
    %cst_98 = arith.constant 9.99999974E-6 : f32
    %256 = vector.broadcast %cst_98 : f32 to vector<4x1xf32>
    %257 = arith.addf %255, %256 : vector<4x1xf32>
    %258 = math.rsqrt %257 : vector<4x1xf32>
    %259 = vector.broadcast %258 : vector<4x1xf32> to vector<4x32xf32>
    %260 = arith.mulf %250, %259 : vector<4x32xf32>
    %261 = vector.broadcast %4 : vector<1x32xf32> to vector<4x32xf32>
    %262 = arith.mulf %260, %261 : vector<4x32xf32>
    %263 = vector.broadcast %5 : vector<1x32xf32> to vector<4x32xf32>
    %264 = arith.addf %262, %263 : vector<4x32xf32>
    %cst_99 = arith.constant dense<0.000000e+00> : vector<4x32xf32>
    %265 = tpu.matmul %264, %3, %cst_99 {dimension_numbers = #tpu.dot_dimension_numbers<[1], [0], [0], [1], [0, 0, 1, 1], [], []>} : vector<4x32xf32>, vector<32x32xf32>, vector<4x32xf32> -> vector<4x32xf32>
    %cst_100 = arith.constant dense<0.000000e+00> : vector<4x16xf32>
    %266 = tpu.matmul %265, %39, %cst_100 {dimension_numbers = #tpu.dot_dimension_numbers<[1], [1], [0], [0], [0, 0, 1, 0], [], []>} : vector<4x32xf32>, vector<16x32xf32>, vector<4x16xf32> -> vector<4x16xf32>
    %cst_101 = arith.constant 0.176776692 : f32
    %267 = vector.broadcast %cst_101 : f32 to vector<4x16xf32>
    %268 = arith.mulf %266, %267 : vector<4x16xf32>
    %cst_102 = arith.constant dense<0xFF800000> : vector<16xf32>
    %269 = vector.multi_reduction <maximumf>, %268, %cst_102 [0] : vector<4x16xf32> to vector<16xf32>
    %270 = vector.shape_cast %269 : vector<16xf32> to vector<1x16xf32>
    %271 = vector.broadcast %270 : vector<1x16xf32> to vector<4x16xf32>
    %272 = arith.subf %268, %271 : vector<4x16xf32>
    %273 = math.exp %272 : vector<4x16xf32>
    %cst_103 = arith.constant dense<0.000000e+00> : vector<16xf32>
    %274 = vector.multi_reduction <add>, %273, %cst_103 [0] : vector<4x16xf32> to vector<16xf32>
    %275 = vector.shape_cast %274 : vector<16xf32> to vector<1x16xf32>
    %276 = vector.broadcast %275 : vector<1x16xf32> to vector<4x16xf32>
    %277 = arith.divf %273, %276 : vector<4x16xf32>
    %cst_104 = arith.constant 9.99999993E-9 : f32
    %278 = vector.broadcast %cst_104 : f32 to vector<4x16xf32>
    %279 = arith.addf %277, %278 : vector<4x16xf32>
    %cst_105 = arith.constant dense<0.000000e+00> : vector<4xf32>
    %280 = vector.multi_reduction <add>, %279, %cst_105 [1] : vector<4x16xf32> to vector<4xf32>
    %281 = vector.shape_cast %280 : vector<4xf32> to vector<4x1xf32>
    %282 = vector.broadcast %281 : vector<4x1xf32> to vector<4x16xf32>
    %283 = arith.divf %279, %282 : vector<4x16xf32>
    %cst_106 = arith.constant dense<0.000000e+00> : vector<4x32xf32>
    %284 = tpu.matmul %283, %40, %cst_106 {dimension_numbers = #tpu.dot_dimension_numbers<[1], [0], [0], [1], [0, 0, 1, 1], [], []>} : vector<4x16xf32>, vector<16x32xf32>, vector<4x32xf32> -> vector<4x32xf32>
    %cst_107 = arith.constant dense<0.000000e+00> : vector<4x96xf32>
    %285 = tpu.matmul %284, %6, %cst_107 {dimension_numbers = #tpu.dot_dimension_numbers<[1], [0], [0], [1], [0, 0, 1, 1], [], []>} : vector<4x32xf32>, vector<32x96xf32>, vector<4x96xf32> -> vector<4x96xf32>
    %286 = vector.broadcast %8 : vector<1x96xf32> to vector<4x96xf32>
    %287 = arith.addf %285, %286 : vector<4x96xf32>
    %cst_108 = arith.constant dense<0.000000e+00> : vector<4x96xf32>
    %288 = tpu.matmul %244, %7, %cst_108 {dimension_numbers = #tpu.dot_dimension_numbers<[1], [0], [0], [1], [0, 0, 1, 1], [], []>} : vector<4x32xf32>, vector<32x96xf32>, vector<4x96xf32> -> vector<4x96xf32>
    %289 = vector.broadcast %9 : vector<1x96xf32> to vector<4x96xf32>
    %290 = arith.addf %288, %289 : vector<4x96xf32>
    %291 = vector.extract_strided_slice %287 {offsets = [0, 0], sizes = [4, 32], strides = [1, 1]} : vector<4x96xf32> to vector<4x32xf32>
    %292 = vector.extract_strided_slice %290 {offsets = [0, 0], sizes = [4, 32], strides = [1, 1]} : vector<4x96xf32> to vector<4x32xf32>
    %293 = arith.addf %291, %292 : vector<4x32xf32>
    %294 = arith.negf %293 : vector<4x32xf32>
    %295 = math.exp %294 : vector<4x32xf32>
    %cst_109 = arith.constant 1.000000e+00 : f32
    %296 = vector.broadcast %cst_109 : f32 to vector<4x32xf32>
    %297 = arith.addf %296, %295 : vector<4x32xf32>
    %298 = arith.divf %296, %297 : vector<4x32xf32>
    %299 = vector.extract_strided_slice %287 {offsets = [0, 32], sizes = [4, 32], strides = [1, 1]} : vector<4x96xf32> to vector<4x32xf32>
    %300 = vector.extract_strided_slice %290 {offsets = [0, 32], sizes = [4, 32], strides = [1, 1]} : vector<4x96xf32> to vector<4x32xf32>
    %301 = arith.addf %299, %300 : vector<4x32xf32>
    %302 = arith.negf %301 : vector<4x32xf32>
    %303 = math.exp %302 : vector<4x32xf32>
    %cst_110 = arith.constant 1.000000e+00 : f32
    %304 = vector.broadcast %cst_110 : f32 to vector<4x32xf32>
    %305 = arith.addf %304, %303 : vector<4x32xf32>
    %306 = arith.divf %304, %305 : vector<4x32xf32>
    %307 = vector.extract_strided_slice %287 {offsets = [0, 64], sizes = [4, 32], strides = [1, 1]} : vector<4x96xf32> to vector<4x32xf32>
    %308 = vector.extract_strided_slice %290 {offsets = [0, 64], sizes = [4, 32], strides = [1, 1]} : vector<4x96xf32> to vector<4x32xf32>
    %309 = arith.mulf %298, %308 : vector<4x32xf32>
    %310 = arith.addf %307, %309 : vector<4x32xf32>
    %311 = math.tanh %310 : vector<4x32xf32>
    %cst_111 = arith.constant 1.000000e+00 : f32
    %312 = vector.broadcast %cst_111 : f32 to vector<4x32xf32>
    %313 = arith.subf %312, %306 : vector<4x32xf32>
    %314 = arith.mulf %313, %311 : vector<4x32xf32>
    %315 = arith.mulf %306, %244 : vector<4x32xf32>
    %316 = arith.addf %314, %315 : vector<4x32xf32>
    %cst_112 = arith.constant dense<0.000000e+00> : vector<4xf32>
    %317 = vector.multi_reduction <add>, %316, %cst_112 [1] : vector<4x32xf32> to vector<4xf32>
    %318 = vector.shape_cast %317 : vector<4xf32> to vector<4x1xf32>
    %cst_113 = arith.constant 3.200000e+01 : f32
    %319 = vector.broadcast %cst_113 : f32 to vector<4x1xf32>
    %320 = arith.divf %318, %319 : vector<4x1xf32>
    %321 = vector.broadcast %320 : vector<4x1xf32> to vector<4x32xf32>
    %322 = arith.subf %316, %321 : vector<4x32xf32>
    %323 = arith.mulf %322, %322 : vector<4x32xf32>
    %cst_114 = arith.constant dense<0.000000e+00> : vector<4xf32>
    %324 = vector.multi_reduction <add>, %323, %cst_114 [1] : vector<4x32xf32> to vector<4xf32>
    %325 = vector.shape_cast %324 : vector<4xf32> to vector<4x1xf32>
    %cst_115 = arith.constant 3.200000e+01 : f32
    %326 = vector.broadcast %cst_115 : f32 to vector<4x1xf32>
    %327 = arith.divf %325, %326 : vector<4x1xf32>
    %cst_116 = arith.constant 9.99999974E-6 : f32
    %328 = vector.broadcast %cst_116 : f32 to vector<4x1xf32>
    %329 = arith.addf %327, %328 : vector<4x1xf32>
    %330 = math.rsqrt %329 : vector<4x1xf32>
    %331 = vector.broadcast %330 : vector<4x1xf32> to vector<4x32xf32>
    %332 = arith.mulf %322, %331 : vector<4x32xf32>
    %333 = vector.broadcast %10 : vector<1x32xf32> to vector<4x32xf32>
    %334 = arith.mulf %332, %333 : vector<4x32xf32>
    %335 = vector.broadcast %11 : vector<1x32xf32> to vector<4x32xf32>
    %336 = arith.addf %334, %335 : vector<4x32xf32>
    %cst_117 = arith.constant dense<0.000000e+00> : vector<4x128xf32>
    %337 = tpu.matmul %336, %12, %cst_117 {dimension_numbers = #tpu.dot_dimension_numbers<[1], [0], [0], [1], [0, 0, 1, 1], [], []>} : vector<4x32xf32>, vector<32x128xf32>, vector<4x128xf32> -> vector<4x128xf32>
    %338 = vector.broadcast %13 : vector<1x128xf32> to vector<4x128xf32>
    %339 = arith.addf %337, %338 : vector<4x128xf32>
    %cst_118 = arith.constant 0.000000e+00 : f32
    %340 = vector.broadcast %cst_118 : f32 to vector<4x128xf32>
    %341 = arith.maximumf %339, %340 : vector<4x128xf32>
    %cst_119 = arith.constant dense<0.000000e+00> : vector<4x32xf32>
    %342 = tpu.matmul %341, %14, %cst_119 {dimension_numbers = #tpu.dot_dimension_numbers<[1], [0], [0], [1], [0, 0, 1, 1], [], []>} : vector<4x128xf32>, vector<128x32xf32>, vector<4x32xf32> -> vector<4x32xf32>
    %343 = vector.broadcast %15 : vector<1x32xf32> to vector<4x32xf32>
    %344 = arith.addf %342, %343 : vector<4x32xf32>
    %345 = arith.addf %316, %344 : vector<4x32xf32>
    %c0_120 = arith.constant 0 : index
    %c0_121 = arith.constant 0 : index
    %c0_122 = arith.constant 0 : index
    %346 = vector.load %arg19[%c0_120, %c0_121, %c0_122] : memref<1x4x32xf32, #tpu.memory_space<vmem>>, vector<1x4x32xf32>
    %347 = vector.shape_cast %346 : vector<1x4x32xf32> to vector<4x32xf32>
    %348 = vector.shape_cast %345 : vector<4x32xf32> to vector<1x4x32xf32>
    tpu.vector_store %arg19[%c0_120, %c0_121, %c0_122], %348 {strides = array<i32>} : memref<1x4x32xf32, #tpu.memory_space<vmem>>, vector<1x4x32xf32>,
    %c0_123 = arith.constant 0 : index
    %c0_124 = arith.constant 0 : index
    %c0_125 = arith.constant 0 : index
    %349 = vector.load %arg20[%c0_123, %c0_124, %c0_125] : memref<1x4x16xf32, #tpu.memory_space<vmem>>, vector<1x4x16xf32>
    %350 = vector.shape_cast %349 : vector<1x4x16xf32> to vector<4x16xf32>
    %351 = vector.shape_cast %277 : vector<4x16xf32> to vector<1x4x16xf32>
    tpu.vector_store %arg20[%c0_123, %c0_124, %c0_125], %351 {strides = array<i32>} : memref<1x4x16xf32, #tpu.memory_space<vmem>>, vector<1x4x16xf32>,
    return
  }
  func.func @transform_0(%arg0: i32) -> (i32, i32, i32) {
    %c0_i32 = arith.constant 0 : i32
    %c0_i32_0 = arith.constant 0 : i32
    %c0_i32_1 = arith.constant 0 : i32
    return %arg0, %c0_i32, %c0_i32_0 : i32, i32, i32
  }
  func.func @transform_1(%arg0: i32) -> (i32, i32, i32) {
    %c0_i32 = arith.constant 0 : i32
    %c0_i32_0 = arith.constant 0 : i32
    %c0_i32_1 = arith.constant 0 : i32
    return %arg0, %c0_i32, %c0_i32_0 : i32, i32, i32
  }
  func.func @transform_2(%arg0: i32) -> (i32, i32) {
    %c0_i32 = arith.constant 0 : i32
    %c0_i32_0 = arith.constant 0 : i32
    %c0_i32_1 = arith.constant 0 : i32
    return %c0_i32, %c0_i32_0 : i32, i32
  }
  func.func @transform_3(%arg0: i32) -> (i32, i32) {
    %c0_i32 = arith.constant 0 : i32
    %c0_i32_0 = arith.constant 0 : i32
    %c0_i32_1 = arith.constant 0 : i32
    return %c0_i32, %c0_i32_0 : i32, i32
  }
  func.func @transform_4(%arg0: i32) -> (i32, i32) {
    %c0_i32 = arith.constant 0 : i32
    %c0_i32_0 = arith.constant 0 : i32
    %c0_i32_1 = arith.constant 0 : i32
    return %c0_i32, %c0_i32_0 : i32, i32
  }
  func.func @transform_5(%arg0: i32) -> (i32, i32) {
    %c0_i32 = arith.constant 0 : i32
    %c0_i32_0 = arith.constant 0 : i32
    %c0_i32_1 = arith.constant 0 : i32
    return %c0_i32, %c0_i32_0 : i32, i32
  }
  func.func @transform_6(%arg0: i32) -> (i32, i32) {
    %c0_i32 = arith.constant 0 : i32
    %c0_i32_0 = arith.constant 0 : i32
    %c0_i32_1 = arith.constant 0 : i32
    return %c0_i32, %c0_i32_0 : i32, i32
  }
  func.func @transform_7(%arg0: i32) -> (i32, i32) {
    %c0_i32 = arith.constant 0 : i32
    %c0_i32_0 = arith.constant 0 : i32
    %c0_i32_1 = arith.constant 0 : i32
    return %c0_i32, %c0_i32_0 : i32, i32
  }
  func.func @transform_8(%arg0: i32) -> (i32, i32) {
    %c0_i32 = arith.constant 0 : i32
    %c0_i32_0 = arith.constant 0 : i32
    %c0_i32_1 = arith.constant 0 : i32
    return %c0_i32, %c0_i32_0 : i32, i32
  }
  func.func @transform_9(%arg0: i32) -> (i32, i32) {
    %c0_i32 = arith.constant 0 : i32
    %c0_i32_0 = arith.constant 0 : i32
    %c0_i32_1 = arith.constant 0 : i32
    return %c0_i32, %c0_i32_0 : i32, i32
  }
  func.func @transform_10(%arg0: i32) -> (i32, i32) {
    %c0_i32 = arith.constant 0 : i32
    %c0_i32_0 = arith.constant 0 : i32
    %c0_i32_1 = arith.constant 0 : i32
    return %c0_i32, %c0_i32_0 : i32, i32
  }
  func.func @transform_11(%arg0: i32) -> (i32, i32) {
    %c0_i32 = arith.constant 0 : i32
    %c0_i32_0 = arith.constant 0 : i32
    %c0_i32_1 = arith.constant 0 : i32
    return %c0_i32, %c0_i32_0 : i32, i32
  }
  func.func @transform_12(%arg0: i32) -> (i32, i32) {
    %c0_i32 = arith.constant 0 : i32
    %c0_i32_0 = arith.constant 0 : i32
    %c0_i32_1 = arith.constant 0 : i32
    return %c0_i32, %c0_i32_0 : i32, i32
  }
  func.func @transform_13(%arg0: i32) -> (i32, i32) {
    %c0_i32 = arith.constant 0 : i32
    %c0_i32_0 = arith.constant 0 : i32
    %c0_i32_1 = arith.constant 0 : i32
    return %c0_i32, %c0_i32_0 : i32, i32
  }
  func.func @transform_14(%arg0: i32) -> (i32, i32) {
    %c0_i32 = arith.constant 0 : i32
    %c0_i32_0 = arith.constant 0 : i32
    %c0_i32_1 = arith.constant 0 : i32
    return %c0_i32, %c0_i32_0 : i32, i32
  }
  func.func @transform_15(%arg0: i32) -> (i32, i32) {
    %c0_i32 = arith.constant 0 : i32
    %c0_i32_0 = arith.constant 0 : i32
    %c0_i32_1 = arith.constant 0 : i32
    return %c0_i32, %c0_i32_0 : i32, i32
  }
  func.func @transform_16(%arg0: i32) -> (i32, i32) {
    %c0_i32 = arith.constant 0 : i32
    %c0_i32_0 = arith.constant 0 : i32
    %c0_i32_1 = arith.constant 0 : i32
    return %c0_i32, %c0_i32_0 : i32, i32
  }
  func.func @transform_17(%arg0: i32) -> (i32, i32) {
    %c0_i32 = arith.constant 0 : i32
    %c0_i32_0 = arith.constant 0 : i32
    %c0_i32_1 = arith.constant 0 : i32
    return %c0_i32, %c0_i32_0 : i32, i32
  }
  func.func @transform_18(%arg0: i32) -> (i32, i32, i32) {
    %c0_i32 = arith.constant 0 : i32
    %c0_i32_0 = arith.constant 0 : i32
    %c0_i32_1 = arith.constant 0 : i32
    return %arg0, %c0_i32, %c0_i32_0 : i32, i32, i32
  }
  func.func @transform_19(%arg0: i32) -> (i32, i32, i32) {
    %c0_i32 = arith.constant 0 : i32
    %c0_i32_0 = arith.constant 0 : i32
    %c0_i32_1 = arith.constant 0 : i32
    return %arg0, %c0_i32, %c0_i32_0 : i32, i32, i32
  }
}

</mosaic_0001>

<bundles_post_ra>
// kernel: tpu_custom_call.1
= control target key start
LH: loop header
LB: loop body
LE: loop exit
PB: predicated region body
PF: predicated region fallthrough
CT: control target
= control target key end

     0   :  { %s3190_s0 = inlined_call_operand.vmem [shape: f32[2,16,32], index: 0, kind: input, shape index: {}]   ;;  %s3191_s1 = inlined_call_operand.hbm [shape: f32[2,4,32], index: 1, kind: input, shape index: {}]   ;;  %s3192_s2 = inlined_call_operand.vmem [shape: f32[1,32], index: 2, kind: input, shape index: {}]   ;;  %s3193_s3 = inlined_call_operand.hbm [shape: f32[1,32], index: 3, kind: input, shape index: {}]   ;;  %s3194_s4 = inlined_call_operand.vmem [shape: f32[32,64], index: 4, kind: input, shape index: {}]   ;;  %s3195_s5 = inlined_call_operand.vmem [shape: f32[32,32], index: 5, kind: input, shape index: {}]   ;;  %s3196_s6 = inlined_call_operand.vmem [shape: f32[1,32], index: 6, kind: input, shape index: {}]   ;;  %s3197_s7 = inlined_call_operand.vmem [shape: f32[1,32], index: 7, kind: input, shape index: {}]   ;;  %s3198_s8 = inlined_call_operand.vmem [shape: f32[32,96], index: 8, kind: input, shape index: {}]   ;;  %s3199_s9 = inlined_call_operand.vmem [shape: f32[32,96], index: 9, kind: input, shape index: {}]   ;;  %s3200_s10 = inlined_call_operand.vmem [shape: f32[1,96], index: 10, kind: input, shape index: {}]   ;;  %s3201_s11 = inlined_call_operand.vmem [shape: f32[1,96], index: 11, kind: input, shape index: {}]   ;;  %s3202_s12 = inlined_call_operand.vmem [shape: f32[1,32], index: 12, kind: input, shape index: {}]   ;;  %s3203_s13 = inlined_call_operand.vmem [shape: f32[1,32], index: 13, kind: input, shape index: {}]   ;;  %s3204_s14 = inlined_call_operand.hbm [shape: f32[32,128], index: 14, kind: input, shape index: {}]   ;;  %s3205_s15 = inlined_call_operand.vmem [shape: f32[1,128], index: 15, kind: input, shape index: {}]   ;;  %s3206_s16 = inlined_call_operand.vmem [shape: f32[128,32], index: 16, kind: input, shape index: {}]   ;;  %s3207_s17 = inlined_call_operand.vmem [shape: f32[1,32], index: 17, kind: input, shape index: {}]   ;;  %s3208_s18 = inlined_call_operand.hbm [shape: f32[2,4,32], index: 18, kind: output, shape index: {0}]   ;;  %s3209_s19 = inlined_call_operand.hbm [shape: f32[2,4,16], index: 19, kind: output, shape index: {1}]  }
   0x1   :  { %3221 = sst [smem:[#allocation21_spill]] %s3190_s0 }
   0x2   :  { %3222 = sst [smem:[#allocation22_spill]] %s3191_s1 }
   0x3   :  { %3223 = sst [smem:[#allocation23_spill]] %s3192_s2 }
   0x4   :  { %3224 = sst [smem:[#allocation24_spill]] %s3193_s3 }
   0x5   :  { %3225 = sst [smem:[#allocation25_spill]] %s3194_s4 }
   0x6   :  { %3226 = sst [smem:[#allocation26_spill]] %s3195_s5 }
   0x7   :  { %3227 = sst [smem:[#allocation27_spill]] %s3204_s14 }
   0x8   :  { %3228 = sst [smem:[#allocation28_spill]] %s3207_s17 }
   0x9   :  { %3229 = sst [smem:[#allocation29_spill]] %s3208_s18 }
   0xa   :  { %3230 = sst [smem:[#allocation30_spill]] %s3209_s19 }
   0xb   :  { %25 = vsyncpa [#allocation3], 0 }
   0xc   :  { %27 = vsyncpa [#allocation3 + $0x1], 0 }
   0xd   :  { %28 = vsyncpa [#allocation6], 0 }
   0xe   :  { %29 = vsyncpa [#allocation4], 0 }
   0xf   :  { %31 = vsyncpa [#allocation4 + $0x1], 0 }
  0x10   :  { %32 = vsyncpa [#allocation10], 0 }
  0x11   :  { %34 = vsyncpa [#allocation10 + $0x1], 0  ;;  %s2514_s0 = smov 0   ;;  %s2516_s30 = smov 0  }
  0x12   :  { %s2518_s20 = smov 0   ;;  %s2520_s21 = smov 0  }
  0x13 LB: > { %3231 = sst [smem:[#allocation15_spill]] %s2392_s0  ;;  %s2535_s1 = sadd.s32 4294967295, %s2404_s21   ;;  %s2404_s21 = sphi %s2520_s21, %s3257_s21   ;;  %s2400_s20 = sphi %s2518_s20, %s3259_s20   ;;  %s2396_s30 = sphi %s2516_s30, %s3261_s30   ;;  %s2392_s0 = sphi %s2514_s0, %s3260_s0  }
  0x14   : > { %3232 = sst [smem:[#allocation16_spill]] %s2400_s20  ;;  %s2006_s22 = sadd.s32 4294967294, %s2404_s21  }
  0x15   : > { %p86_p0 = scmp.ne.s32.totalorder %s2396_s30, %s2392_s0  ;;  %p87_p1 = scmp.eq.s32.totalorder %s2535_s1, 0 }
  0x16   : > { %p446_p2 = scmp.eq.s32.totalorder %s2535_s1, 1  ;;  %p452_p3 = scmp.eq.s32.totalorder %s2006_s22, 1 }
  0x17   : > { %p2544_p4 = por %p87_p1, %p86_p0  ;;  %p2007_p5 = scmp.ge.s32.totalorder %s2404_s21, 1 }
  0x18   : > { %p2549_p6 = por %p452_p3, %p86_p0  ;;  %p485_p7 = scmp.lt.s32.totalorder %s2404_s21, 3 }
  0x19   : > { %s3236_s3 = sld [smem:[#allocation24_spill]]  ;;  %s2406_s28 = smov [#allocation5]  }
  0x1a   : > { %s3234_s23 = scalar_select %p2549_p6, 1, 0 }
  0x1b   : > { %p2557_p8 = pnand %p2007_p5, %p485_p7  ;;  %s502_s29 = sshll.u32 %s2406_s28, 4  ;;  %s503_s29 = int_to_ptr.vmem [resolvable:$true] %s502_s29 }
  0x1c   : > { %3235 = sst [smem:[#allocation17_spill]] %s3234_s23  ;;  %s2408_s28 = smov 128  }
  0x1d   : > { %p2071_p10 = pneg %p2557_p8  ;;  %s3238_s14 = sld [smem:[#allocation27_spill]] }
  0x1e   : > { %s2409_s0 = smov 8   ;;  %s2570_s18 = sadd.s32 1, %s2404_s21  }
  0x1f   : > { %s500_s26 = sshll.u32 %s3236_s3, 4  ;;  %p2072_p11 = pnand %p2071_p10, %p87_p1  ;;  %s501_s26 = int_to_ptr.hbm [resolvable:$true] %s500_s26 }
  0x20   : > { %s2407_s3 = smov [#allocation7]   ;;  %3239 = sst [smem:[#allocation18_spill]] %s2570_s18 }
  0x21   : > { %s543_s23 = sshll.u32 %s2407_s3, 4  ;;  %s70_s22 = ssub.s32 %s2404_s21, %s2570_s18  ;;  %s544_s23 = int_to_ptr.vmem [resolvable:$true] %s543_s23 }
  0x22   : > { %2074 = dma.hbm_to_vmem [thread:$0]  (!%p2072_p11), %s501_s26, 16, %s503_s29, [#allocation6]  }
  0x23   : > { %s541_s25 = sshll.u32 %s3238_s14, 4  ;;  %p71_p12 = scmp.eq.s32.totalorder %s70_s22, 0  ;;  %s542_s25 = int_to_ptr.hbm [resolvable:$true] %s541_s25 }
  0x24   : > { %2077 = dma.hbm_to_vmem [thread:$0]  (!%p2072_p11), %s542_s25, 512, %s544_s23, [#allocation6], %s2408_s28, %s2408_s28, %s2409_s0  }
  0x25   : > { %s73_s24 = sadd.s32 1, %s2400_s20  ;;  %p80_p13 = scmp.ne.s32.totalorder %s2400_s20, %s2396_s30 }
  0x26   : > { %p81_p0 = scmp.eq.s32.totalorder %s2404_s21, 0  ;;  %p2091_p7 = scmp.lt.s32.totalorder %s2404_s21, 2 }
  0x27   : > { %s2579_s14 = scalar_select %p71_p12, %s2400_s20, %s73_s24  }
  0x28   : > { %p82_p3 = por %p81_p0, %p80_p13  ;;  %p2583_p5 = por %p446_p2, %p80_p13 }
  0x29   : > { %3240 = sst [smem:[#allocation19_spill]] %s2579_s14  ;;  %s574_s26 = sand.u32 1, %s2400_s20  }
  0x2a   : > { %s3241_s3 = scalar_select %p2583_p5, 1, 0 }
  0x2b   : > { %s2011_s29 = sshll.u32 %s574_s26, 2  ;;  %s2012_s0 = sshll.u32 %s2404_s21, 2 }
  0x2c   : > { %3242 = sst [smem:[#allocation20_spill]] %s3241_s3  ;;  %s578_s22 = scalar_lea.vmem [#allocation2], %s2011_s29 }
  0x2d   : > { %s3243_s28 = sld [smem:[#allocation22_spill]]  ;;  %s586_s19 = sshll.u32 %s578_s22, 4  ;;  %s587_s19 = int_to_ptr.vmem [resolvable:$true] %s586_s19 }
  0x2e   : > { %p2593_p10 = pnand %p2091_p7, %p82_p3  ;;  %s575_s14 = scalar_lea.sflag [#allocation3], %s574_s26 }
  0x30   : > { %p2276_p11 = pneg %p2593_p10 }
  0x33   : > { %s582_s18 = scalar_lea.hbm %s3243_s28, %s2012_s0 }
  0x34   : > { %s584_s17 = sshll.u32 %s582_s18, 4  ;;  %s2279_s18 = scalar_lea.hbm %s3243_s28, 8  ;;  %s585_s17 = int_to_ptr.hbm [resolvable:$true] %s584_s17 }
  0x35   : > { %s2272_s3 = sshra.s32 %s585_s17, 4  ;;  %s2273_s3 = int_to_ptr.hbm [resolvable:$true] %s2272_s3 }
  0x36   : > { %s2274_s20 = scalar_lea.hbm %s2273_s3, 4  ;;  %p2280_p0 = scmp.lt.s32.totalorder %s2273_s3, %s3243_s28 }
  0x37   : > { %p2275_p2 = scmp.ne.s32.totalorder %s2273_s3, %s2274_s20  ;;  %p2281_p3 = scmp.lt.s32.totalorder %s2279_s18, %s2274_s20 }
  0x39   : > { %p2277_p12 = pnand %p2276_p11, %p2275_p2  ;;  %p2282_p7 = por %p2281_p3, %p2280_p0 }
  0x3b   : > { %p2278_p13 = pneg %p2277_p12 }
  0x3d   : > { %p2283_p9 = pnand %p2282_p7, %p2278_p13 }
  0x3f   : > { %2286 = shalt.err (!%p2283_p9)
}
  0x40   : > { %2081 = dma.hbm_to_vmem [thread:$0]  (!%p2593_p10), %s585_s17, 64, %s587_s19, %s575_s14  }
  0x41   : > { %595 = sbr.rel (%p2557_p8) target bundleno = 7526 (0x1d66), region = 92  ;;  %s2610_s26 = sand.u32 (!%p2557_p8), 1, %s2396_s30  }
  0x42   : > { %s2613_s22 = sshll.u32 (!%p2557_p8), %s2610_s26, 2  ;;  %s598_s3 = scalar_lea.sflag (!%p2557_p8), [#allocation3], %s2610_s26 }
  0x43   : > { %s601_s20 = scalar_lea.vmem (!%p2557_p8), [#allocation2], %s2613_s22 }
  0x46   : > { %2375 = dma.done.wait (%p2544_p4), %s598_s3, 64  }
  0x47   : > { %2377 = vsyncadd (%p2544_p4), %s598_s3, 4294967232 }
  0x48   : > { %2379 = dma.done.wait (%p87_p1), [#allocation6], 528  }
  0x49   : > { %2381 = vsyncadd (%p87_p1), [#allocation6], 4294966768  ;;  %p677_p8 = scmp.lt.s32.totalorder %s2535_s1, 1  ;;  %s3245_s24 = sld [smem:[#allocation21_spill]]  ;;  %vm730_vm0 = vcmask 261120   ;;  %vm822_vm1 = vcmask 257024  }
  0x4a   : > { %v2630_v1 = vld [vmem:[%s601_s20] sm:$0xf]  ;;  %v2410_v6 = vmov 32.0   ;;  %s3246_s4 = sld [smem:[#allocation25_spill]]  ;;  %v2698_v44 = vld [vmem:[%s3206_s16 + $0x78] sm:$0xff]  ;;  %v2703_v45 = vld [vmem:[%s3206_s16 + $0x70] sm:$0xff] }
  0x4b   : > { %s678_s14 = scalar_select %p677_p8, %s2535_s1, 1  ;;  %v823_v3 = vsel %vm822_vm1, %v2630_v1, 0.0  ;;  %2150 = vrcp.f32 %v2410_v6  ;;  %v2709_v47 = vld [vmem:[%s3206_s16 + $0x68] sm:$0xff]  ;;  %v2716_v51 = vld [vmem:[%s3206_s16 + $0x60] sm:$0xff]  ;;  %v2722_v55 = vld [vmem:[%s3206_s16 + $0x58] sm:$0xff]  ;;  %vm906_vm12 = vcmask 125952  }
  0x4c   : > { %824 = vadd.xlane.f32.xlu1 %v823_v3  ;;  %s3247_s5 = sld [smem:[#allocation26_spill]]  ;;  %v2731_v59 = vld [vmem:[%s3206_s16 + $0x50] sm:$0xff]  ;;  %v2141_v63 = vld [vmem:[#allocation5] ss:$0 sm:$0xff]  ;;  %s3220_s23 = smov 96  }
  0x4d   : > { %s2056_s17 = sshll.u32 %s678_s14, 4  ;;  %s3248_s18 = sld [smem:[#allocation23_spill]] }
  0x4e   : > { %s676_s14 = scalar_lea.vmem [#allocation9], %s2613_s22  ;;  %s2052_s19 = sshll.u32 %s2535_s1, 2 }
  0x4f   : > { %s681_s0 = scalar_lea.vmem %s3245_s24, %s2056_s17  ;;  %s2412_s17 = smov 32  }
  0x50   : > { %v728_v0 = vld [vmem:[%s681_s0] sm:$0xff]  ;;  %v729_v4 = vld [vmem:[%s681_s0 + $0x8] sm:$0xff]  ;;  %v687_v28 = vld [vmem:[%s3246_s4 + $0x18] sm:$0xff]  ;;  %s2413_s24 = smov 64   ;;  %s3249_s0 = sld [smem:[#allocation28_spill]] }
  0x51   : > { %v731_v2 = vsel %vm730_vm0, %v728_v0, 0.0  ;;  %v734_v5 = vsel %vm730_vm0, %v729_v4, 0.0  ;;  %v2151_v7 = vpop.eup %2150  ;;  %810 = vmatpush.msra.mxu0 %v687_v28  ;;  %v686_v29 = vld [vmem:[%s3246_s4 + $0x10] sm:$0xff]  ;;  %v685_v30 = vld [vmem:[%s3246_s4 + $0x8] sm:$0xff]  ;;  %v684_v31 = vld [vmem:[%s3246_s4] sm:$0xff]  ;;  %s3251_s2 = sld [smem:[#allocation30_spill]] }
  0x52   : > { %732 = vadd.xlane.f32.xlu0 %v731_v2  ;;  %v738_v8 = vmul.f32 32.0, %v2151_v7  ;;  %vm742_vm2 = vweird.f32 %v2151_v7  ;;  %v2673_v35 = vld [vmem:[%s3247_s5 + $0x18] sm:$0xff]  ;;  %v2679_v36 = vld [vmem:[%s3247_s5 + $0x10] sm:$0xff]  ;;  %v2684_v37 = vld [vmem:[%s3247_s5 + $0x8] sm:$0xff]  ;;  %s1843_s3 = scalar_lea.sflag [#allocation10], %s2610_s26 }
  0x53   : > { %811 = vmatpush.msra.mxu0 %v686_v29  ;;  %868 = vmatpush.msra.mxu2 %v2673_v35  ;;  %v2691_v40 = vld [vmem:[%s3247_s5] sm:$0xff] }
  0x54   : > { %v739_v9 = vsub.f32 1.0, %v738_v8  ;;  %v2140_v58 = vld [vmem:[%s3248_s18] ss:$0 sm:$0xff]  ;;  %v2750_v8 = vld [vmem:[%s3206_s16 + $0x38] sm:$0xff]  ;;  %s1869_s18 = sshll.u32 %s676_s14, 4  ;;  %s1870_s18 = int_to_ptr.vmem [resolvable:$true] %s1869_s18 }
  0x55   : > { %812 = vmatpush.msra.mxu0 %v685_v30  ;;  %869 = vmatpush.msra.mxu2 %v2679_v36  ;;  %v2786_v29 = vld [vmem:[%s3206_s16 + $0x20] sm:$0xff]  ;;  %v2797_v30 = vld [vmem:[%s3206_s16 + $0x10] sm:$0xff] }
  0x56   : > { %v740_v10 = vmul.f32 %v2151_v7, %v739_v9 }
  0x57   : > { %813 = vmatpush.msra.mxu0 %v684_v31  ;;  %870 = vmatpush.msra.mxu2 %v2684_v37  ;;  %v2803_v31 = vld [vmem:[%s3206_s16 + $0x8] sm:$0xff]  ;;  %s1867_s29 = scalar_lea.hbm %s3251_s2, %s2052_s19  ;;  %s2322_s1 = scalar_lea.hbm %s3251_s2, 8 }
  0x58   : > { %v741_v11 = vadd.f32 %v2151_v7, %v740_v10  ;;  %s1871_s25 = sshll.u32 %s1867_s29, 4  ;;  %s1872_s25 = int_to_ptr.hbm [resolvable:$true] %s1871_s25 }
  0x59   : > { %871 = vmatpush.msra.mxu2 %v2691_v40  ;;  %1156 = vmatpush.msrb.mxu0 %v2698_v44  ;;  %s2316_s20 = sshra.s32 %s1872_s25, 4  ;;  %s2317_s20 = int_to_ptr.hbm [resolvable:$true] %s2316_s20 }
  0x5a   : > { %735 = vadd.xlane.f32.xlu0 %v734_v5  ;;  %v2636_v12 = vsel %vm742_vm2, %v2151_v7, %v741_v11  ;;  %v2757_v11 = vld [vmem:[%s3206_s16 + $0x30] sm:$0xff]  ;;  %p2323_p10 = scmp.lt.s32.totalorder %s2317_s20, %s3251_s2 }
  0x5b   : > { %1157 = vmatpush.msrb.mxu0 %v2703_v45 }
  0x5d   : > { %1158 = vmatpush.msrb.mxu0 %v2709_v47 }
  0x5f   : > { %1159 = vmatpush.msrb.mxu0 %v2716_v51 }
  0x61   : > { %1160 = vmatpush.msrb.mxu0 %v2722_v55 }
  0x63   : > { %1161 = vmatpush.msrb.mxu0 %v2731_v59 }
  0xbf   : > { %v825_v17 = vpop.xlane.xlu1 %824 }
  0xc0   : > { %v826_v21 = vmul.f32 %v825_v17, %v2636_v12 }
  0xc2   : > { %v2649_v23 = vsub.f32 %v2630_v1, %v826_v21 }
  0xc4   : > { %v828_v26 = vmul.f32 %v2649_v23, %v2649_v23 }
  0xc5   : > { %v733_v13 = vpop.xlane.xlu0 %732 }
  0xc6   : > { %v744_v14 = vmul.f32 %v2636_v12, %v733_v13  ;;  %v829_v27 = vsel %vm822_vm1, %v828_v26, 0.0  ;;  %v2778_v26 = vld [vmem:[%s3197_s7] ss:$0 sm:$0xff] }
  0xc8   : > { %v2639_v15 = vsub.f32 %v728_v0, %v744_v14  ;;  %v2738_v0 = vld [vmem:[%s3206_s16 + $0x48] sm:$0xff] }
  0xc9   : > { %1162 = vmatpush.msrb.mxu0 %v2738_v0 }
  0xca   : > { %v748_v16 = vmul.f32 %v2639_v15, %v2639_v15 }
  0xcc   : > { %v750_v18 = vsel %vm730_vm0, %v748_v16, 0.0  ;;  %v2764_v16 = vld [vmem:[%s3206_s16 + $0x28] sm:$0xff] }
  0xcd   : > { %751 = vadd.xlane.f32.xlu1 %v750_v18  ;;  %v736_v19 = vpop.xlane.xlu0 %735 }
  0xce   : > { %v745_v20 = vmul.f32 %v2636_v12, %v736_v19 }
  0xd0   : > { %v2646_v22 = vsub.f32 %v729_v4, %v745_v20  ;;  %v2744_v4 = vld [vmem:[%s3206_s16 + $0x40] sm:$0xff] }
  0xd1   : > { %1163 = vmatpush.msrb.mxu0 %v2744_v4 }
  0xd2   : > { %v749_v24 = vmul.f32 %v2646_v22, %v2646_v22 }
  0xd3   : > { %1164 = vmatpush.msrb.mxu0 %v2750_v8 }
  0xd4   : > { %v753_v25 = vsel %vm730_vm0, %v749_v24, 0.0 }
  0xd5   : > { %754 = vadd.xlane.f32.xlu2 %v753_v25  ;;  %1165 = vmatpush.msrb.mxu0 %v2757_v11 }
  0xd7   : > { %1166 = vmatpush.msrb.mxu0 %v2764_v16 }
  0xd9   : > { %1167 = vmatpush.msrb.mxu0 %v2786_v29 }
  0xdd   : > { %830 = vadd.xlane.f32.xlu2 %v829_v27 }
 0x140   : > { %v752_v32 = vpop.xlane.xlu1 %751 }
 0x141   : > { %v756_v33 = vmul.f32 %v752_v32, %v2636_v12  ;;  %v2810_v32 = vld [vmem:[%s3206_s16] sm:$0xff] }
 0x143   : > { %v758_v34 = vadd.f32 1e-05, %v756_v33 }
 0x145   : > { %2152 = vrsqrt.f32 %v758_v34  ;;  %vm766_vm4 = vweird.f32 %v758_v34 }
 0x148   : > { %v755_v38 = vpop.xlane.xlu2 %754 }
 0x149   : > { %v757_v39 = vmul.f32 %v755_v38, %v2636_v12 }
 0x14b   : > { %v2153_v41 = vpop.eup %2152  ;;  %v759_v42 = vadd.f32 1e-05, %v757_v39  ;;  %v2824_v39 = vld [vmem:[#allocation7 + $0x18] sm:$0xff] }
 0x14c   : > { %v761_v43 = vmul.f32 %v2153_v41, %v758_v34  ;;  %vm767_vm3 = vweird.f32 %v2153_v41 }
 0x14d   : > { %2154 = vrsqrt.f32 %v759_v42  ;;  %vm768_vm5 = vmor %vm766_vm4, %vm767_vm3  ;;  %vm776_vm7 = vweird.f32 %v759_v42 }
 0x14e   : > { %v762_v46 = vmul.f32 %v2153_v41, %v761_v43  ;;  %v2835_v43 = vld [vmem:[#allocation7 + $0x8] sm:$0xff] }
 0x150   : > { %v763_v48 = vmul.f32 0.5, %v762_v46  ;;  %v831_v49 = vpop.xlane.xlu2 %830  ;;  %v2838_v46 = vld [vmem:[#allocation7] sm:$0xff] }
 0x151   : > { %v832_v50 = vmul.f32 %v831_v49, %v2636_v12 }
 0x152   : > { %v764_v52 = vsub.f32 1.5, %v763_v48 }
 0x153   : > { %v2155_v53 = vpop.eup %2154  ;;  %v833_v54 = vadd.f32 1e-05, %v832_v50 }
 0x154   : > { %v765_v56 = vmul.f32 %v2153_v41, %v764_v52  ;;  %v771_v57 = vmul.f32 %v2155_v53, %v759_v42  ;;  %vm777_vm6 = vweird.f32 %v2155_v53 }
 0x155   : > { %2156 = vrsqrt.f32 %v833_v54  ;;  %vm778_vm8 = vmor %vm776_vm7, %vm777_vm6  ;;  %vm840_vm10 = vweird.f32 %v833_v54  ;;  %vm964_vm7 = vcmask 130048  }
 0x156   : > { %v769_v60 = vsel %vm768_vm5, %v2153_v41, %v765_v56  ;;  %v772_v61 = vmul.f32 %v2155_v53, %v771_v57  ;;  %v2830_v41 = vld [vmem:[#allocation7 + $0x10] sm:$0xff] }
 0x157   : > { %v780_v62 = vmul.f32 %v769_v60, %v2639_v15 }
 0x158   : > { %v773_v2 = vmul.f32 0.5, %v772_v61 }
 0x159   : > { %v785_v3 = vmul.f32 %v2140_v58, %v780_v62 }
 0x15a   : > { %v774_v5 = vsub.f32 1.5, %v773_v2 }
 0x15b   : > { %v2157_v6 = vpop.eup %2156  ;;  %v790_v7 = vadd.f32 %v2141_v63, %v785_v3 }
 0x15c   : > { %v775_v9 = vmul.f32 %v2155_v53, %v774_v5  ;;  %v835_v10 = vmul.f32 %v2157_v6, %v833_v54  ;;  %vm841_vm9 = vweird.f32 %v2157_v6 }
 0x15d   : > { %2021 = vmatmul.msk.f32.vlgmr.msra.gmra.mxu0 %vm730_vm0, %v790_v7  ;;  %vm842_vm11 = vmor %vm840_vm10, %vm841_vm9 }
 0x15e   : > { %v779_v13 = vsel %vm778_vm8, %v2155_v53, %v775_v9  ;;  %v836_v14 = vmul.f32 %v2157_v6, %v835_v10 }
 0x15f   : > { %v781_v15 = vmul.f32 %v779_v13, %v2646_v22  ;;  %v2772_v22 = vld [vmem:[%s3196_s6] ss:$0 sm:$0xff] }
 0x160   : > { %v837_v17 = vmul.f32 0.5, %v836_v14 }
 0x161   : > { %v786_v18 = vmul.f32 %v2140_v58, %v781_v15 }
 0x162   : > { %v838_v19 = vsub.f32 1.5, %v837_v17 }
 0x163   : > { %v791_v20 = vadd.f32 %v2141_v63, %v786_v18 }
 0x164   : > { %v839_v21 = vmul.f32 %v2157_v6, %v838_v19 }
 0x165   : > { %2022 = vmatmul.msk.f32.gmra.mxu0 %vm730_vm0, %v791_v20 }
 0x166   : > { %v843_v24 = vsel %vm842_vm11, %v2157_v6, %v839_v21 }
 0x167   : > { %v844_v25 = vmul.f32 %v843_v24, %v2649_v23  ;;  %v2792_v23 = vld [vmem:[%s3206_s16 + $0x18] sm:$0xff] }
 0x168   : > { %1168 = vmatpush.msrb.mxu0 %v2792_v23 }
 0x169   : > { %v848_v27 = vmul.f32 %v2772_v22, %v844_v25 }
 0x16a   : > { %1169 = vmatpush.msrb.mxu0 %v2797_v30 }
 0x16b   : > { %v852_v28 = vadd.f32 %v2778_v26, %v848_v27 }
 0x16c   : > { %1170 = vmatpush.msrb.mxu0 %v2803_v31 }
 0x16d   : > { %2023 = vmatmul.msk.f32.vlgmr.msra.gmra.mxu2 %vm730_vm0, %v852_v28 }
 0x16e   : > { %1171 = vmatpush.msrb.mxu0 %v2810_v32 }
 0x1da   : > { %v2813_v33 = vpop.f32.mrf.mxu0 }
 0x1e2   : > { %v2815_v34 = vpop.f32.mrf.mxu0 }
 0x1e3   : > { %2024 = vmatpush.xpose.msk.msrb.mxu2 %vm730_vm0, %v2815_v34  ;;  %2033 = vmatpush.xpose.msk.msra.mxu0 %vm730_vm0, %v2815_v34  ;;  %v2135_v38 = vpack.i.bf16 %v2813_v33, %v2815_v34 }
 0x1e5   : > { %2136 = vrot.lane.b32.xlu1 %v2135_v38, %s3220_s23 }
 0x1e7   : > { %2025 = vmatpush.xpose.msk.msrb.mxu2 %vm730_vm0, %v2813_v33  ;;  %2034 = vmatpush.xpose.msk.msra.mxu0 %vm730_vm0, %v2813_v33 }
 0x1eb   : > { %1144 = vmatpush.msra.mxu2 %v2824_v39 }
 0x1ed   : > { %1145 = vmatpush.msra.mxu2 %v2830_v41  ;;  %1077 = vrot.lane.b32.xlu1 %v2630_v1, %s2412_s17 }
 0x1ef   : > { %1146 = vmatpush.msra.mxu2 %v2835_v43 }
 0x1f0   : > { %v873_v42 = vpop.f32.mrf.mxu2 }
 0x1f1   : > { %2026 = vmatmul.msk.f32.vlgmr.msrb.gmra.mxu2 %vm730_vm0, %v873_v42 }
 0x1f2   : > { %1147 = vmatpush.msra.mxu2 %v2838_v46 }
 0x257   : > { %v2137_v48 = vpop.permute.xlu1 %2136 }
 0x258   : > { %v2841_v49 = vunpack.i.l.bf16 %v2137_v48  ;;  %v2843_v50 = vunpack.i.h.bf16 %v2137_v48 }
 0x25a   : > { %982 = vmatpush.msra.mxu3 %v2841_v49  ;;  %1336 = vmatpush.msrb.mxu2 %v2841_v49 }
 0x25c   : > { %983 = vmatpush.msra.mxu3 %v2843_v50  ;;  %1337 = vmatpush.msrb.mxu2 %v2843_v50 }
 0x274   : > { %v902_v52 = vpop.f32.mrf.mxu2 }
 0x275   : > { %v905_v53 = vmul.f32 0.17677669, %v902_v52  ;;  %v2855_v52 = vld [vmem:[%s3199_s9 + $0x18] sm:$0xff] }
 0x276   : > { %1032 = vmatpush.msra.mxu1 %v2855_v52 }
 0x277   : > { %v907_v54 = vsel %vm906_vm12, %v905_v53, -inf }
 0x278   : > { %v908_v56 = vrot.slane %v907_v54, 4 }
 0x27a   : > { %v909_v57 = vmax.f32 %v907_v54, %v908_v56  ;;  %v2866_v54 = vld [vmem:[%s3198_s8 + $0x18] sm:$0xff]  ;;  %v2871_v56 = vld [vmem:[%s3198_s8 + $0x10] sm:$0xff] }
 0x27b   : > { %1006 = vmatpush.msrb.mxu3 %v2866_v54 }
 0x27c   : > { %v910_v58 = vrot.slane %v909_v57, 2 }
 0x27d   : > { %1007 = vmatpush.msrb.mxu3 %v2871_v56 }
 0x27e   : > { %v911_v60 = vmax.f32 %v909_v57, %v910_v58  ;;  %v2876_v57 = vld [vmem:[%s3199_s9 + $0x8] sm:$0xff] }
 0x27f   : > { %v2883_v58 = vld [vmem:[%s3198_s8 + $0x8] sm:$0xff] }
 0x280   : > { %v912_v61 = vrot.slane %v911_v60, 1  ;;  %1008 = vmatpush.msrb.mxu3 %v2883_v58 }
 0x282   : > { %v913_v62 = vmax.f32 %v911_v60, %v912_v61  ;;  %v2888_v60 = vld [vmem:[%s3199_s9] sm:$0xff] }
 0x283   : > { %v2895_v61 = vld [vmem:[%s3198_s8] sm:$0xff] }
 0x284   : > { %v914_v63 = vsub.f32 %v905_v53, %v913_v62  ;;  %v2860_v53 = vld [vmem:[%s3199_s9 + $0x10] sm:$0xff]  ;;  %1009 = vmatpush.msrb.mxu3 %v2895_v61 }
 0x285   : > { %1033 = vmatpush.msra.mxu1 %v2860_v53 }
 0x286   : > { %v915_v2 = vmul.f32 1.442695, %v914_v63 }
 0x287   : > { %1034 = vmatpush.msra.mxu1 %v2876_v57 }
 0x288   : > { %2158 = vpow2.f32 %v915_v2 }
 0x289   : > { %1035 = vmatpush.msra.mxu1 %v2888_v60 }
 0x28a   : > { %2029 = vmatmul.msk.f32.vlgmr.msra.gmra.mxu1 %vm730_vm0, %v2630_v1  ;;  %v2932_v1 = vld [vmem:[%s3200_s10] ss:$0 sm:$0xff] }
 0x28b   : > { %1379 = vmatpush.msrb.mxu1 %v2855_v52 }
 0x28d   : > { %1380 = vmatpush.msrb.mxu1 %v2860_v53 }
 0x28e   : > { %v2159_v3 = vpop.eup %2158 }
 0x28f   : > { %v917_v5 = vsel %vm906_vm12, %v2159_v3, 0.0  ;;  %1381 = vmatpush.msrb.mxu1 %v2876_v57 }
 0x290   : > { %v918_v6 = vrot.slane %v917_v5, 4 }
 0x291   : > { %1382 = vmatpush.msrb.mxu1 %v2888_v60 }
 0x292   : > { %v919_v7 = vadd.f32 %v918_v6, %v917_v5 }
 0x293   : > { %1558 = vmatpush.msra.mxu1 %v2673_v35 }
 0x294   : > { %v920_v9 = vrot.slane %v919_v7, 2 }
 0x295   : > { %1559 = vmatpush.msra.mxu1 %v2679_v36 }
 0x296   : > { %v921_v10 = vadd.f32 %v920_v9, %v919_v7 }
 0x297   : > { %1560 = vmatpush.msra.mxu1 %v2684_v37 }
 0x298   : > { %v922_v13 = vrot.slane %v921_v10, 1 }
 0x299   : > { %1561 = vmatpush.msra.mxu1 %v2691_v40 }
 0x29a   : > { %v923_v14 = vadd.f32 %v922_v13, %v921_v10 }
 0x29c   : > { %2160 = vrcp.f32 %v923_v14  ;;  %v935_v19 = vand.u32 2147483648, %v923_v14  ;;  %v933_v21 = vand.u32 2147483647, %v923_v14  ;;  %vm929_vm14 = vweird.f32 %v923_v14 }
 0x29e   : > { %v936_v25 = vor.u32 1.1754944e-38, %v935_v19  ;;  %vm934_vm2 = vcmp.eq.f32.partialorder %v933_v21, 8.507059e+37 }
 0x2a2   : > { %v2161_v15 = vpop.eup %2160 }
 0x2a3   : > { %v925_v17 = vmul.f32 %v2161_v15, %v923_v14  ;;  %vm930_vm13 = vweird.f32 %v2161_v15 }
 0x2a4   : > { %vm931_vm15 = vmor %vm929_vm14, %vm930_vm13 }
 0x2a5   : > { %v926_v18 = vsub.f32 1.0, %v925_v17  ;;  %v2920_v17 = vld [vmem:[%s3201_s11] ss:$0 sm:$0xff] }
 0x2a7   : > { %v927_v20 = vmul.f32 %v2161_v15, %v926_v18 }
 0x2a9   : > { %v928_v24 = vadd.f32 %v2161_v15, %v927_v20 }
 0x2ab   : > { %v932_v27 = vsel %vm931_vm15, %v2161_v15, %v928_v24 }
 0x2ac   : > { %v937_v28 = vsel %vm934_vm2, %v936_v25, %v932_v27 }
 0x2ad   : > { %v938_v38 = vmul.f32 %v2159_v3, %v937_v28 }
 0x2af   : > { %v939_v42 = vadd.f32 1e-08, %v938_v38 }
 0x2b1   : > { %v940_v48 = vsel %vm906_vm12, %v939_v42, 0.0 }
 0x2b2   : > { %941 = vadd.xlane.f32.xlu0 %v940_v48 }
 0x307   : > { %v1037_v18 = vpop.f32.mrf.mxu1 }
 0x308   : > { %v1038_v19 = vadd.f32 %v2920_v17, %v1037_v18 }
 0x30a   : > { %1061 = vrot.lane.b32.xlu2 %v1038_v19, %s2413_s24 }
 0x325   : > { %v942_v62 = vpop.xlane.xlu0 %941 }
 0x326   : > { %2162 = vrcp.f32 %v942_v62  ;;  %v954_v5 = vand.u32 2147483648, %v942_v62  ;;  %v952_v7 = vand.u32 2147483647, %v942_v62  ;;  %vm948_vm4 = vweird.f32 %v942_v62 }
 0x328   : > { %v955_v10 = vor.u32 1.1754944e-38, %v954_v5  ;;  %vm953_vm6 = vcmp.eq.f32.partialorder %v952_v7, 8.507059e+37 }
 0x32c   : > { %v2163_v63 = vpop.eup %2162 }
 0x32d   : > { %v944_v2 = vmul.f32 %v2163_v63, %v942_v62  ;;  %vm949_vm3 = vweird.f32 %v2163_v63 }
 0x32e   : > { %vm950_vm5 = vmor %vm948_vm4, %vm949_vm3 }
 0x32f   : > { %v945_v3 = vsub.f32 1.0, %v944_v2 }
 0x331   : > { %v946_v6 = vmul.f32 %v2163_v63, %v945_v3 }
 0x333   : > { %v947_v9 = vadd.f32 %v2163_v63, %v946_v6 }
 0x335   : > { %v951_v13 = vsel %vm950_vm5, %v2163_v63, %v947_v9 }
 0x336   : > { %v956_v14 = vsel %vm953_vm6, %v955_v10, %v951_v13  ;;  %v1078_v13 = vpop.permute.xlu1 %1077 }
 0x337   : > { %v957_v15 = vmul.f32 %v956_v14, %v939_v42 }
 0x339   : > { %2027 = vmatmul.msk.f32.vlgmr.msra.gmra.mxu3 %vm964_vm7, %v957_v15 }
 0x33a   : > { %1236 = vmatpush.msra.mxu3 %v2673_v35 }
 0x33c   : > { %1237 = vmatpush.msra.mxu3 %v2679_v36 }
 0x33e   : > { %1238 = vmatpush.msra.mxu3 %v2684_v37 }
 0x340   : > { %1239 = vmatpush.msra.mxu3 %v2691_v40 }
 0x364   : > { %v1062_v63 = vpop.permute.xlu2 %1061 }
 0x3bc   : > { %v985_v35 = vpop.f32.mrf.mxu3 }
 0x3bd   : > { %2028 = vmatmul.msk.f32.vlgmr.msrb.gmra.mxu3 %vm730_vm0, %v985_v35 }
 0x3be   : > { %1357 = vmatpush.msrb.mxu3 %v2866_v54 }
 0x3c0   : > { %1358 = vmatpush.msrb.mxu3 %v2871_v56 }
 0x3c2   : > { %1359 = vmatpush.msrb.mxu3 %v2883_v58 }
 0x3c4   : > { %1360 = vmatpush.msrb.mxu3 %v2895_v61 }
 0x440   : > { %v1011_v36 = vpop.f32.mrf.mxu3 }
 0x441   : > { %v1012_v37 = vadd.f32 %v2932_v1, %v1011_v36 }
 0x443   : > { %v1040_v40 = vadd.f32 %v1038_v19, %v1012_v37 }
 0x445   : > { %v2030_v20 = vmul.f32 -1.442695, %v1040_v40 }
 0x447   : > { %2164 = vpow2.f32 %v2030_v20 }
 0x44d   : > { %v2165_v21 = vpop.eup %2164 }
 0x44e   : > { %v1044_v24 = vadd.f32 1.0, %v2165_v21 }
 0x450   : > { %2166 = vrcp.f32 %v1044_v24  ;;  %v1056_v38 = vand.u32 2147483648, %v1044_v24  ;;  %v1054_v48 = vand.u32 2147483647, %v1044_v24  ;;  %vm1050_vm9 = vweird.f32 %v1044_v24 }
 0x452   : > { %v1057_v2 = vor.u32 1.1754944e-38, %v1056_v38  ;;  %vm1055_vm11 = vcmp.eq.f32.partialorder %v1054_v48, 8.507059e+37 }
 0x456   : > { %v2167_v25 = vpop.eup %2166 }
 0x457   : > { %v1046_v27 = vmul.f32 %v2167_v25, %v1044_v24  ;;  %vm1051_vm8 = vweird.f32 %v2167_v25 }
 0x458   : > { %vm1052_vm10 = vmor %vm1050_vm9, %vm1051_vm8 }
 0x459   : > { %v1047_v28 = vsub.f32 1.0, %v1046_v27  ;;  %v2147_v27 = vld [vmem:[%s3203_s13] ss:$0 sm:$0xff] }
 0x45b   : > { %v1048_v42 = vmul.f32 %v2167_v25, %v1047_v28 }
 0x45d   : > { %v1049_v62 = vadd.f32 %v2167_v25, %v1048_v42 }
 0x45f   : > { %v1053_v3 = vsel %vm1052_vm10, %v2167_v25, %v1049_v62  ;;  %v2146_v25 = vld [vmem:[%s3202_s12] ss:$0 sm:$0xff] }
 0x460   : > { %v1058_v5 = vsel %vm1055_vm11, %v1057_v2, %v1053_v3 }
 0x461   : > { %v1064_v6 = vmul.f32 %v1062_v63, %v1058_v5  ;;  %v1071_v14 = vsub.f32 1.0, %v1058_v5  ;;  %v1080_v18 = vmul.f32 %v1078_v13, %v1058_v5 }
 0x463   : > { %1066 = vrot.lane.b32.xlu0 %v1064_v6, %s2413_s24 }
 0x4d5   : > { %v1067_v7 = vpop.permute.xlu0 %1066 }
 0x4d6   : > { %v1069_v9 = vadd.f32 %v1067_v7, %v1012_v37 }
 0x4d8   : > { %2168 = vtanh.f32 %v1069_v9 }
 0x4de   : > { %v2169_v10 = vpop.eup %2168 }
 0x4df   : > { %1073 = vrot.lane.b32.xlu2 %v2169_v10, %s3220_s23 }
 0x539   : > { %v1074_v15 = vpop.permute.xlu2 %1073 }
 0x53a   : > { %v1076_v19 = vmul.f32 %v1074_v15, %v1071_v14 }
 0x53c   : > { %v1081_v35 = vadd.f32 %v1080_v18, %v1076_v19 }
 0x53e   : > { %1083 = vrot.lane.b32.xlu0 %v1081_v35, %s3220_s23 }
 0x5b0   : > { %v1084_v36 = vpop.permute.xlu0 %1083 }
 0x5b1   : > { %v1086_v40 = vsel %vm822_vm1, %v1084_v36, 0.0  ;;  %v2966_v36 = vld [vmem:[%s3205_s15] ss:$0 sm:$0xff] }
 0x5b2   : > { %1087 = vadd.xlane.f32.xlu2 %v1086_v40 }
 0x625   : > { %v1088_v20 = vpop.xlane.xlu2 %1087 }
 0x626   : > { %v1089_v21 = vmul.f32 %v1088_v20, %v2636_v12 }
 0x628   : > { %v1090_v37 = vsub.f32 %v1081_v35, %v1089_v21 }
 0x62a   : > { %v1091_v24 = vmul.f32 %v1090_v37, %v1090_v37 }
 0x62c   : > { %1093 = vrot.lane.b32.xlu1 %v1091_v24, %s3220_s23 }
 0x634   : > { %1114 = vrot.lane.b32.xlu1 %v2146_v25, %s2412_s17 }
 0x63c   : > { %1120 = vrot.lane.b32.xlu1 %v2147_v27, %s2412_s17 }
 0x69e   : > { %v1094_v28 = vpop.permute.xlu1 %1093 }
 0x69f   : > { %v1096_v38 = vsel %vm822_vm1, %v1094_v28, 0.0 }
 0x6a0   : > { %1097 = vadd.xlane.f32.xlu0 %v1096_v38 }
 0x6a6   : > { %v2951_v5 = vpop.permute.xlu1 %1114 }
 0x6ae   : > { %v2953_v14 = vpop.permute.xlu1 %1120 }
 0x713   : > { %v1098_v42 = vpop.xlane.xlu0 %1097 }
 0x714   : > { %v1099_v48 = vmul.f32 %v1098_v42, %v2636_v12 }
 0x716   : > { %v1100_v62 = vadd.f32 1e-05, %v1099_v48 }
 0x718   : > { %2170 = vrsqrt.f32 %v1100_v62  ;;  %vm1107_vm14 = vweird.f32 %v1100_v62 }
 0x71e   : > { %v2171_v63 = vpop.eup %2170 }
 0x71f   : > { %v1102_v2 = vmul.f32 %v2171_v63, %v1100_v62  ;;  %vm1108_vm13 = vweird.f32 %v2171_v63 }
 0x720   : > { %vm1109_vm15 = vmor %vm1107_vm14, %vm1108_vm13 }
 0x721   : > { %v1103_v3 = vmul.f32 %v2171_v63, %v1102_v2 }
 0x723   : > { %v1104_v6 = vmul.f32 0.5, %v1103_v3 }
 0x725   : > { %v1105_v7 = vsub.f32 1.5, %v1104_v6 }
 0x727   : > { %v1106_v9 = vmul.f32 %v2171_v63, %v1105_v7 }
 0x729   : > { %v1110_v10 = vsel %vm1109_vm15, %v2171_v63, %v1106_v9 }
 0x72a   : > { %v1111_v13 = vmul.f32 %v1110_v10, %v1090_v37  ;;  %v2974_v37 = vld [vmem:[%s3249_s0] ss:$0 sm:$0xff] }
 0x72c   : > { %v1117_v15 = vmul.f32 %v2951_v5, %v1111_v13 }
 0x72e   : > { %v1123_v18 = vadd.f32 %v2953_v14, %v1117_v15 }
 0x730   : > { %1128 = vrot.lane.b32.xlu1 %v1123_v18, %s3220_s23 }
 0x7a2   : > { %v1129_v19 = vpop.permute.xlu1 %1128 }
 0x7a3   : > { %2031 = vmatmul.msk.f32.vlgmr.msra.gmra.mxu2 %vm730_vm0, %v1129_v19 }
 0x7a4   : > { %1475 = vmatpush.msra.mxu2 %v2824_v39 }
 0x7a6   : > { %1476 = vmatpush.msra.mxu2 %v2830_v41 }
 0x7a8   : > { %1477 = vmatpush.msra.mxu2 %v2835_v43 }
 0x7aa   : > { %1478 = vmatpush.msra.mxu2 %v2838_v46 }
 0x826   : > { %v1149_v40 = vpop.f32.mrf.mxu2 }
 0x827   : > { %v1150_v20 = vadd.f32 %v2966_v36, %v1149_v40 }
 0x829   : > { %v1152_v21 = vmax.f32 %v1150_v20, 0.0 }
 0x82b   : > { %1172 = vmatmul.f32.vlgmr.msrb.gmra.mxu0 %v1152_v21 }
 0x82c   : > { %1658 = vmatpush.msrb.mxu0 %v2841_v49 }
 0x82e   : > { %1659 = vmatpush.msrb.mxu0 %v2843_v50 }
 0x8a8   : > { %v1173_v24 = vpop.f32.mrf.mxu0 }
 0x8a9   : > { %v1174_v25 = vadd.f32 %v2974_v37, %v1173_v24 }
 0x8ab   : > { %1177 = vrot.lane.b32.xlu1 %v1174_v25, %s2412_s17 }
 0x91d   : > { %v1178_v27 = vpop.permute.xlu1 %1177 }
 0x91e   : > { %v2978_v28 = vadd.f32 %v1178_v27, %v1081_v35 }
 0x920   : > { %1182 = vrot.lane.b32.xlu1 %v2978_v28, %s3220_s23 }
 0x992   : > { %v1183_v38 = vpop.permute.xlu1 %1182 }
 0x993   : > { %2038 = vmatmul.msk.f32.vlgmr.msrb.gmra.mxu1 %vm730_vm0, %v1183_v38  ;;  %v1185_v49 = vsel %vm822_vm1, %v1183_v38, 0.0 }
 0x994   : > { %1186 = vadd.xlane.f32.xlu2 %v1185_v49  ;;  %1679 = vmatpush.msrb.mxu1 %v2866_v54 }
 0x996   : > { %1680 = vmatpush.msrb.mxu1 %v2871_v56 }
 0x998   : > { %1681 = vmatpush.msrb.mxu1 %v2883_v58 }
 0x99a   : > { %1682 = vmatpush.msrb.mxu1 %v2895_v61 }
 0x9ac   : > { %1211 = vrot.lane.b32.xlu2 %v2772_v22, %s2412_s17 }
 0xa07   : > { %v1187_v50 = vpop.xlane.xlu2 %1186 }
 0xa08   : > { %v1188_v35 = vmul.f32 %v1187_v50, %v2636_v12 }
 0xa0a   : > { %v1189_v42 = vsub.f32 %v2978_v28, %v1188_v35 }
 0xa0c   : > { %v1190_v48 = vmul.f32 %v1189_v42, %v1189_v42 }
 0xa0e   : > { %1192 = vrot.lane.b32.xlu0 %v1190_v48, %s3220_s23 }
 0xa10   : > { %v1384_v19 = vpop.f32.mrf.mxu1 }
 0xa11   : > { %v3005_v40 = vadd.f32 %v2920_v17, %v1384_v19 }
 0xa16   : > { %1215 = vrot.lane.b32.xlu0 %v2778_v26, %s2412_s17  ;;  %v2997_v26 = vpop.permute.xlu2 %1211 }
 0xa80   : > { %v1193_v54 = vpop.permute.xlu0 %1192 }
 0xa81   : > { %v1195_v56 = vsel %vm822_vm1, %v1193_v54, 0.0 }
 0xa82   : > { %1196 = vadd.xlane.f32.xlu1 %v1195_v56 }
 0xa88   : > { %v2999_v13 = vpop.permute.xlu0 %1215 }
 0xaf5   : > { %v1197_v58 = vpop.xlane.xlu1 %1196 }
 0xaf6   : > { %v1198_v61 = vmul.f32 %v1197_v58, %v2636_v12 }
 0xaf8   : > { %v1199_v62 = vadd.f32 1e-05, %v1198_v61 }
 0xafa   : > { %2172 = vrsqrt.f32 %v1199_v62  ;;  %vm1206_vm3 = vweird.f32 %v1199_v62 }
 0xb00   : > { %v2173_v22 = vpop.eup %2172 }
 0xb01   : > { %v1201_v63 = vmul.f32 %v2173_v22, %v1199_v62  ;;  %vm1207_vm2 = vweird.f32 %v2173_v22 }
 0xb02   : > { %vm1208_vm4 = vmor %vm1206_vm3, %vm1207_vm2 }
 0xb03   : > { %v1202_v2 = vmul.f32 %v2173_v22, %v1201_v63 }
 0xb05   : > { %v1203_v3 = vmul.f32 0.5, %v1202_v2 }
 0xb07   : > { %v1204_v6 = vsub.f32 1.5, %v1203_v3 }
 0xb09   : > { %v1205_v7 = vmul.f32 %v2173_v22, %v1204_v6 }
 0xb0b   : > { %v1209_v9 = vsel %vm1208_vm4, %v2173_v22, %v1205_v7 }
 0xb0c   : > { %v1210_v10 = vmul.f32 %v1209_v9, %v1189_v42 }
 0xb0e   : > { %v1214_v15 = vmul.f32 %v2997_v26, %v1210_v10 }
 0xb10   : > { %v1218_v18 = vadd.f32 %v2999_v13, %v1214_v15 }
 0xb12   : > { %1220 = vrot.lane.b32.xlu2 %v1218_v18, %s3220_s23 }
 0xb1a   : > { %1408 = vrot.lane.b32.xlu2 %v3005_v40, %s2413_s24 }
 0xb6c   : > { %v1221_v20 = vpop.permute.xlu2 %1220 }
 0xb6d   : > { %2032 = vmatmul.msk.f32.vlgmr.msra.gmra.mxu3 %vm730_vm0, %v1221_v20 }
 0xb6e   : > { %1484 = vmatpush.msra.mxu3 %v2698_v44 }
 0xb70   : > { %1485 = vmatpush.msra.mxu3 %v2703_v45 }
 0xb72   : > { %1486 = vmatpush.msra.mxu3 %v2709_v47 }
 0xb74   : > { %1487 = vmatpush.msra.mxu3 %v2716_v51 }
 0xb76   : > { %1488 = vmatpush.msra.mxu3 %v2722_v55 }
 0xb78   : > { %1489 = vmatpush.msra.mxu3 %v2731_v59 }
 0xb7a   : > { %1490 = vmatpush.msra.mxu3 %v2738_v0 }
 0xb7c   : > { %1491 = vmatpush.msra.mxu3 %v2744_v4 }
 0xb7e   : > { %1492 = vmatpush.msra.mxu3 %v2750_v8 }
 0xb80   : > { %1493 = vmatpush.msra.mxu3 %v2757_v11 }
 0xb82   : > { %1494 = vmatpush.msra.mxu3 %v2764_v16 }
 0xb84   : > { %1495 = vmatpush.msra.mxu3 %v2786_v29 }
 0xb86   : > { %1496 = vmatpush.msra.mxu3 %v2792_v23 }
 0xb88   : > { %1497 = vmatpush.msra.mxu3 %v2797_v30 }
 0xb8a   : > { %1498 = vmatpush.msra.mxu3 %v2803_v31 }
 0xb8c   : > { %1499 = vmatpush.msra.mxu3 %v2810_v32 }
 0xbf0   : > { %v1241_v44 = vpop.f32.mrf.mxu3 }
 0xbf1   : > { %2035 = vmatmul.msk.f32.vlgmr.msra.gmra.mxu0 %vm730_vm0, %v1241_v44 }
 0xbf2   : > { %1797 = vmatpush.msra.mxu0 %v2824_v39 }
 0xbf4   : > { %1798 = vmatpush.msra.mxu0 %v2830_v41 }
 0xbf6   : > { %1799 = vmatpush.msra.mxu0 %v2835_v43 }
 0xbf8   : > { %1800 = vmatpush.msra.mxu0 %v2838_v46 }
 0xc6e   : > { %v1264_v45 = vpop.f32.mrf.mxu0 }
 0xc6f   : > { %v1267_v47 = vmul.f32 0.17677669, %v1264_v45 }
 0xc71   : > { %v1268_v51 = vsel %vm906_vm12, %v1267_v47, -inf }
 0xc72   : > { %v1269_v55 = vrot.slane %v1268_v51, 4 }
 0xc74   : > { %v1270_v59 = vmax.f32 %v1268_v51, %v1269_v55 }
 0xc76   : > { %v1271_v0 = vrot.slane %v1270_v59, 2 }
 0xc78   : > { %v1272_v4 = vmax.f32 %v1270_v59, %v1271_v0 }
 0xc7a   : > { %v1273_v21 = vrot.slane %v1272_v4, 1 }
 0xc7c   : > { %v1274_v24 = vmax.f32 %v1272_v4, %v1273_v21 }
 0xc7e   : > { %v1275_v25 = vsub.f32 %v1267_v47, %v1274_v24 }
 0xc80   : > { %v1276_v27 = vmul.f32 1.442695, %v1275_v25 }
 0xc82   : > { %2174 = vpow2.f32 %v1276_v27 }
 0xc88   : > { %v2175_v39 = vpop.eup %2174 }
 0xc89   : > { %v1278_v41 = vsel %vm906_vm12, %v2175_v39, 0.0 }
 0xc8a   : > { %v1279_v38 = vrot.slane %v1278_v41, 4 }
 0xc8c   : > { %v1280_v43 = vadd.f32 %v1279_v38, %v1278_v41 }
 0xc8e   : > { %v1281_v49 = vrot.slane %v1280_v43, 2 }
 0xc90   : > { %v1282_v46 = vadd.f32 %v1281_v49, %v1280_v43 }
 0xc92   : > { %v1283_v50 = vrot.slane %v1282_v46, 1 }
 0xc94   : > { %v1284_v35 = vadd.f32 %v1283_v50, %v1282_v46 }
 0xc96   : > { %2176 = vrcp.f32 %v1284_v35  ;;  %v1296_v56 = vand.u32 2147483648, %v1284_v35  ;;  %v1294_v61 = vand.u32 2147483647, %v1284_v35  ;;  %vm1290_vm6 = vweird.f32 %v1284_v35 }
 0xc98   : > { %v1297_v22 = vor.u32 1.1754944e-38, %v1296_v56  ;;  %vm1295_vm9 = vcmp.eq.f32.partialorder %v1294_v61, 8.507059e+37 }
 0xc9c   : > { %v2177_v42 = vpop.eup %2176 }
 0xc9d   : > { %v1286_v48 = vmul.f32 %v2177_v42, %v1284_v35  ;;  %vm1291_vm5 = vweird.f32 %v2177_v42 }
 0xc9e   : > { %vm1292_vm8 = vmor %vm1290_vm6, %vm1291_vm5 }
 0xc9f   : > { %v1287_v54 = vsub.f32 1.0, %v1286_v48 }
 0xca1   : > { %v1288_v58 = vmul.f32 %v2177_v42, %v1287_v54 }
 0xca3   : > { %v1289_v62 = vadd.f32 %v2177_v42, %v1288_v58 }
 0xca5   : > { %v1293_v63 = vsel %vm1292_vm8, %v2177_v42, %v1289_v62  ;;  %v1409_v42 = vpop.permute.xlu2 %1408 }
 0xca6   : > { %v1298_v2 = vsel %vm1295_vm9, %v1297_v22, %v1293_v63 }
 0xca7   : > { %v1299_v3 = vmul.f32 %v2175_v39, %v1298_v2 }
 0xca9   : > { %v1300_v6 = vadd.f32 1e-08, %v1299_v3 }
 0xcab   : > { %v1301_v7 = vsel %vm906_vm12, %v1300_v6, 0.0 }
 0xcac   : > { %1302 = vadd.xlane.f32.xlu0 %v1301_v7 }
 0xd1f   : > { %v1303_v9 = vpop.xlane.xlu0 %1302 }
 0xd20   : > { %2178 = vrcp.f32 %v1303_v9  ;;  %v1315_v19 = vand.u32 2147483648, %v1303_v9  ;;  %v1313_v44 = vand.u32 2147483647, %v1303_v9  ;;  %vm1309_vm11 = vweird.f32 %v1303_v9 }
 0xd22   : > { %v1316_v47 = vor.u32 1.1754944e-38, %v1315_v19  ;;  %vm1314_vm14 = vcmp.eq.f32.partialorder %v1313_v44, 8.507059e+37 }
 0xd26   : > { %v2179_v10 = vpop.eup %2178 }
 0xd27   : > { %v1305_v15 = vmul.f32 %v2179_v10, %v1303_v9  ;;  %vm1310_vm10 = vweird.f32 %v2179_v10 }
 0xd28   : > { %vm1311_vm13 = vmor %vm1309_vm11, %vm1310_vm10 }
 0xd29   : > { %v1306_v18 = vsub.f32 1.0, %v1305_v15 }
 0xd2b   : > { %v1307_v20 = vmul.f32 %v2179_v10, %v1306_v18 }
 0xd2d   : > { %v1308_v45 = vadd.f32 %v2179_v10, %v1307_v20 }
 0xd2f   : > { %v1312_v51 = vsel %vm1311_vm13, %v2179_v10, %v1308_v45 }
 0xd30   : > { %v1317_v55 = vsel %vm1314_vm14, %v1316_v47, %v1312_v51 }
 0xd31   : > { %v1318_v59 = vmul.f32 %v1317_v55, %v1300_v6 }
 0xd33   : > { %2036 = vmatmul.msk.f32.vlgmr.msrb.gmra.mxu2 %vm964_vm7, %v1318_v59 }
 0xd34   : > { %2042 = vmatpush.xpose.msk.msrb.mxu2 %vm730_vm0, %v2815_v34 }
 0xd38   : > { %2043 = vmatpush.xpose.msk.msrb.mxu2 %vm730_vm0, %v2813_v33 }
 0xdb6   : > { %v1339_v0 = vpop.f32.mrf.mxu2 }
 0xdb7   : > { %2037 = vmatmul.msk.f32.vlgmr.msrb.gmra.mxu3 %vm730_vm0, %v1339_v0 }
 0xe3a   : > { %v1362_v4 = vpop.f32.mrf.mxu3 }
 0xe3b   : > { %v1363_v21 = vadd.f32 %v2932_v1, %v1362_v4 }
 0xe3d   : > { %v1387_v24 = vadd.f32 %v3005_v40, %v1363_v21 }
 0xe3f   : > { %v2039_v25 = vmul.f32 -1.442695, %v1387_v24 }
 0xe41   : > { %2180 = vpow2.f32 %v2039_v25 }
 0xe47   : > { %v2181_v27 = vpop.eup %2180 }
 0xe48   : > { %v1391_v39 = vadd.f32 1.0, %v2181_v27 }
 0xe4a   : > { %2182 = vrcp.f32 %v1391_v39  ;;  %v1403_v34 = vand.u32 2147483648, %v1391_v39  ;;  %v1401_v33 = vand.u32 2147483647, %v1391_v39  ;;  %vm1397_vm2 = vweird.f32 %v1391_v39 }
 0xe4c   : > { %v1404_v50 = vor.u32 1.1754944e-38, %v1403_v34  ;;  %vm1402_vm4 = vcmp.eq.f32.partialorder %v1401_v33, 8.507059e+37 }
 0xe50   : > { %v2183_v41 = vpop.eup %2182 }
 0xe51   : > { %v1393_v38 = vmul.f32 %v2183_v41, %v1391_v39  ;;  %vm1398_vm15 = vweird.f32 %v2183_v41 }
 0xe52   : > { %vm1399_vm3 = vmor %vm1397_vm2, %vm1398_vm15 }
 0xe53   : > { %v1394_v43 = vsub.f32 1.0, %v1393_v38 }
 0xe55   : > { %v1395_v49 = vmul.f32 %v2183_v41, %v1394_v43 }
 0xe57   : > { %v1396_v46 = vadd.f32 %v2183_v41, %v1395_v49 }
 0xe59   : > { %v1400_v35 = vsel %vm1399_vm3, %v2183_v41, %v1396_v46 }
 0xe5a   : > { %v1405_v40 = vsel %vm1402_vm4, %v1404_v50, %v1400_v35 }
 0xe5b   : > { %v1411_v48 = vmul.f32 %v1409_v42, %v1405_v40  ;;  %v1418_v61 = vsub.f32 1.0, %v1405_v40  ;;  %v1424_v22 = vmul.f32 %v1405_v40, %v2978_v28 }
 0xe5d   : > { %1413 = vrot.lane.b32.xlu2 %v1411_v48, %s2413_s24 }
 0xeb7   : > { %v1414_v54 = vpop.permute.xlu2 %1413 }
 0xeb8   : > { %v1416_v56 = vadd.f32 %v1414_v54, %v1363_v21 }
 0xeba   : > { %2184 = vtanh.f32 %v1416_v56 }
 0xec0   : > { %v2185_v58 = vpop.eup %2184 }
 0xec1   : > { %1420 = vrot.lane.b32.xlu1 %v2185_v58, %s3220_s23 }
 0xf33   : > { %v1421_v62 = vpop.permute.xlu1 %1420 }
 0xf34   : > { %v1423_v63 = vmul.f32 %v1421_v62, %v1418_v61 }
 0xf36   : > { %v1425_v2 = vadd.f32 %v1424_v22, %v1423_v63 }
 0xf38   : > { %1427 = vrot.lane.b32.xlu2 %v1425_v2, %s3220_s23 }
 0xf92   : > { %v1428_v3 = vpop.permute.xlu2 %1427 }
 0xf93   : > { %v1430_v6 = vsel %vm822_vm1, %v1428_v3, 0.0 }
 0xf94   : > { %1431 = vadd.xlane.f32.xlu2 %v1430_v6 }
0x1007   : > { %v1432_v7 = vpop.xlane.xlu2 %1431 }
0x1008   : > { %v1433_v9 = vmul.f32 %v1432_v7, %v2636_v12 }
0x100a   : > { %v1434_v10 = vsub.f32 %v1425_v2, %v1433_v9 }
0x100c   : > { %v1435_v15 = vmul.f32 %v1434_v10, %v1434_v10 }
0x100e   : > { %1437 = vrot.lane.b32.xlu0 %v1435_v15, %s3220_s23  ;;  %v2205_v15 = vld [vmem:[%s3206_s16 + $0x70] sm:$0xff] }
0x1080   : > { %v1438_v18 = vpop.permute.xlu0 %1437 }
0x1081   : > { %v1440_v19 = vsel %vm822_vm1, %v1438_v18, 0.0  ;;  %v2208_v18 = vld [vmem:[%s3206_s16 + $0x58] sm:$0xff] }
0x1082   : > { %1441 = vadd.xlane.f32.xlu1 %v1440_v19  ;;  %v2209_v19 = vld [vmem:[%s3206_s16 + $0x50] sm:$0xff] }
0x10f5   : > { %v1442_v28 = vpop.xlane.xlu1 %1441 }
0x10f6   : > { %v1443_v20 = vmul.f32 %v1442_v28, %v2636_v12  ;;  %v2210_v28 = vld [vmem:[%s3206_s16 + $0x48] sm:$0xff] }
0x10f8   : > { %v1444_v44 = vadd.f32 1e-05, %v1443_v20  ;;  %v2211_v20 = vld [vmem:[%s3206_s16 + $0x40] sm:$0xff] }
0x10fa   : > { %2186 = vrsqrt.f32 %v1444_v44  ;;  %vm1451_vm6 = vweird.f32 %v1444_v44 }
0x1100   : > { %v2187_v45 = vpop.eup %2186 }
0x1101   : > { %v1446_v47 = vmul.f32 %v2187_v45, %v1444_v44  ;;  %vm1452_vm5 = vweird.f32 %v2187_v45 }
0x1102   : > { %vm1453_vm8 = vmor %vm1451_vm6, %vm1452_vm5 }
0x1103   : > { %v1447_v51 = vmul.f32 %v2187_v45, %v1446_v47 }
0x1105   : > { %v1448_v55 = vmul.f32 0.5, %v1447_v51 }
0x1107   : > { %v1449_v59 = vsub.f32 1.5, %v1448_v55 }
0x1109   : > { %v1450_v0 = vmul.f32 %v2187_v45, %v1449_v59 }
0x110b   : > { %v1454_v4 = vsel %vm1453_vm8, %v2187_v45, %v1450_v0 }
0x110c   : > { %v1455_v21 = vmul.f32 %v1454_v4, %v1434_v10  ;;  %v2204_v10 = vld [vmem:[%s3206_s16 + $0x78] sm:$0xff] }
0x110e   : > { %v1456_v24 = vmul.f32 %v1455_v21, %v2951_v5 }
0x1110   : > { %v1457_v25 = vadd.f32 %v1456_v24, %v2953_v14 }
0x1112   : > { %1459 = vrot.lane.b32.xlu0 %v1457_v25, %s3220_s23 }
0x1184   : > { %v1460_v27 = vpop.permute.xlu0 %1459 }
0x1185   : > { %2040 = vmatmul.msk.f32.vlgmr.msra.gmra.mxu2 %vm730_vm0, %v1460_v27 }
0x1186   : > { %1701 = vmatpush.msra.mxu2 %v2855_v52 }
0x1188   : > { %1702 = vmatpush.msra.mxu2 %v2860_v53 }
0x118a   : > { %1703 = vmatpush.msra.mxu2 %v2876_v57 }
0x118c   : > { %1704 = vmatpush.msra.mxu2 %v2888_v60 }
0x1208   : > { %v1480_v39 = vpop.f32.mrf.mxu2 }
0x1209   : > { %v1481_v41 = vadd.f32 %v2966_v36, %v1480_v39 }
0x120b   : > { %v1483_v38 = vmax.f32 %v1481_v41, 0.0 }
0x120d   : > { %1500 = vmatmul.f32.vlgmr.msra.gmra.mxu3 %v1483_v38 }
0x1290   : > { %v1501_v43 = vpop.f32.mrf.mxu3 }
0x1291   : > { %v1502_v34 = vadd.f32 %v2974_v37, %v1501_v43 }
0x1293   : > { %1505 = vrot.lane.b32.xlu0 %v1502_v34, %s2412_s17 }
0x1305   : > { %v1506_v49 = vpop.permute.xlu0 %1505 }
0x1306   : > { %v3062_v33 = vadd.f32 %v1506_v49, %v1425_v2 }
0x1308   : > { %1510 = vrot.lane.b32.xlu2 %v3062_v33, %s3220_s23 }
0x1362   : > { %v1511_v52 = vpop.permute.xlu2 %1510 }
0x1363   : > { %v1513_v53 = vsel %vm822_vm1, %v1511_v52, 0.0 }
0x1364   : > { %1514 = vadd.xlane.f32.xlu0 %v1513_v53 }
0x13d7   : > { %v1515_v57 = vpop.xlane.xlu0 %1514 }
0x13d8   : > { %v1516_v60 = vmul.f32 %v1515_v57, %v2636_v12 }
0x13da   : > { %v1517_v46 = vsub.f32 %v3062_v33, %v1516_v60 }
0x13dc   : > { %v1518_v50 = vmul.f32 %v1517_v46, %v1517_v46 }
0x13de   : > { %1520 = vrot.lane.b32.xlu1 %v1518_v50, %s3220_s23 }
0x1450   : > { %v1521_v35 = vpop.permute.xlu1 %1520 }
0x1451   : > { %v1523_v42 = vsel %vm822_vm1, %v1521_v35, 0.0 }
0x1452   : > { %1524 = vadd.xlane.f32.xlu2 %v1523_v42 }
0x14c5   : > { %v1525_v40 = vpop.xlane.xlu2 %1524 }
0x14c6   : > { %v1526_v48 = vmul.f32 %v1525_v40, %v2636_v12 }
0x14c8   : > { %v1527_v54 = vadd.f32 1e-05, %v1526_v48 }
0x14ca   : > { %2188 = vrsqrt.f32 %v1527_v54  ;;  %vm1534_vm10 = vweird.f32 %v1527_v54 }
0x14d0   : > { %v2189_v56 = vpop.eup %2188 }
0x14d1   : > { %v1529_v58 = vmul.f32 %v2189_v56, %v1527_v54  ;;  %vm1535_vm9 = vweird.f32 %v2189_v56 }
0x14d2   : > { %vm1536_vm11 = vmor %vm1534_vm10, %vm1535_vm9 }
0x14d3   : > { %v1530_v61 = vmul.f32 %v2189_v56, %v1529_v58 }
0x14d5   : > { %v1531_v62 = vmul.f32 0.5, %v1530_v61 }
0x14d7   : > { %v1532_v22 = vsub.f32 1.5, %v1531_v62 }
0x14d9   : > { %v1533_v63 = vmul.f32 %v2189_v56, %v1532_v22 }
0x14db   : > { %v1537_v2 = vsel %vm1536_vm11, %v2189_v56, %v1533_v63 }
0x14dc   : > { %v1538_v3 = vmul.f32 %v1537_v2, %v1517_v46 }
0x14de   : > { %v1539_v6 = vmul.f32 %v1538_v3, %v2997_v26  ;;  %v2206_v26 = vld [vmem:[%s3206_s16 + $0x68] sm:$0xff] }
0x14e0   : > { %v1540_v7 = vadd.f32 %v1539_v6, %v2999_v13  ;;  %v2207_v13 = vld [vmem:[%s3206_s16 + $0x60] sm:$0xff] }
0x14e2   : > { %1542 = vrot.lane.b32.xlu1 %v1540_v7, %s3220_s23 }
0x1554   : > { %v1543_v9 = vpop.permute.xlu1 %1542 }
0x1555   : > { %2041 = vmatmul.msk.f32.vlgmr.msra.gmra.mxu1 %vm730_vm0, %v1543_v9 }
0x1556   : > { %1806 = vmatpush.msra.mxu1 %v2204_v10 }
0x1558   : > { %1807 = vmatpush.msra.mxu1 %v2205_v15 }
0x155a   : > { %1808 = vmatpush.msra.mxu1 %v2206_v26 }
0x155c   : > { %1809 = vmatpush.msra.mxu1 %v2207_v13 }
0x155e   : > { %1810 = vmatpush.msra.mxu1 %v2208_v18 }
0x1560   : > { %1811 = vmatpush.msra.mxu1 %v2209_v19 }
0x1562   : > { %1812 = vmatpush.msra.mxu1 %v2210_v28 }
0x1564   : > { %1813 = vmatpush.msra.mxu1 %v2211_v20 }
0x1566   : > { %1814 = vmatpush.msra.mxu1 %v2750_v8 }
0x1568   : > { %1815 = vmatpush.msra.mxu1 %v2757_v11 }
0x156a   : > { %1816 = vmatpush.msra.mxu1 %v2764_v16 }
0x156c   : > { %1817 = vmatpush.msra.mxu1 %v2786_v29 }
0x156e   : > { %1818 = vmatpush.msra.mxu1 %v2792_v23 }
0x1570   : > { %1819 = vmatpush.msra.mxu1 %v2797_v30 }
0x1572   : > { %1820 = vmatpush.msra.mxu1 %v2803_v31 }
0x1574   : > { %1821 = vmatpush.msra.mxu1 %v2810_v32 }
0x15d2   : > { %v1563_v44 = vpop.f32.mrf.mxu1 }
0x15d3   : > { %2044 = vmatmul.msk.f32.vlgmr.msrb.gmra.mxu2 %vm730_vm0, %v1563_v44 }
0x15db   : > { %2047 = vmatmul.msk.f32.vlgmr.msra.gmra.mxu2 %vm730_vm0, %v1511_v52 }
0x1656   : > { %v1586_v8 = vpop.f32.mrf.mxu2 }
0x1657   : > { %v1589_v45 = vmul.f32 0.17677669, %v1586_v8 }
0x1659   : > { %v1590_v11 = vsel %vm906_vm12, %v1589_v45, -inf }
0x165a   : > { %v1591_v16 = vrot.slane %v1590_v11, 4 }
0x165c   : > { %v1592_v47 = vmax.f32 %v1590_v11, %v1591_v16 }
0x165e   : > { %v1593_v29 = vrot.slane %v1592_v47, 2  ;;  %v1706_v51 = vpop.f32.mrf.mxu2 }
0x165f   : > { %v1707_v23 = vadd.f32 %v2920_v17, %v1706_v51 }
0x1660   : > { %v1594_v30 = vmax.f32 %v1592_v47, %v1593_v29 }
0x1661   : > { %1730 = vrot.lane.b32.xlu0 %v1707_v23, %s2413_s24 }
0x1662   : > { %v1595_v31 = vrot.slane %v1594_v30, 1 }
0x1664   : > { %v1596_v32 = vmax.f32 %v1594_v30, %v1595_v31 }
0x1666   : > { %v1597_v55 = vsub.f32 %v1589_v45, %v1596_v32 }
0x1668   : > { %v1598_v59 = vmul.f32 1.442695, %v1597_v55 }
0x166a   : > { %2190 = vpow2.f32 %v1598_v59 }
0x1670   : > { %v2191_v0 = vpop.eup %2190 }
0x1671   : > { %v1600_v4 = vsel %vm906_vm12, %v2191_v0, 0.0 }
0x1672   : > { %v1601_v21 = vrot.slane %v1600_v4, 4 }
0x1674   : > { %v1602_v24 = vadd.f32 %v1601_v21, %v1600_v4 }
0x1676   : > { %v1603_v25 = vrot.slane %v1602_v24, 2 }
0x1678   : > { %v1604_v27 = vadd.f32 %v1603_v25, %v1602_v24 }
0x167a   : > { %v1605_v39 = vrot.slane %v1604_v27, 1 }
0x167c   : > { %v1606_v41 = vadd.f32 %v1605_v39, %v1604_v27 }
0x167e   : > { %2192 = vrcp.f32 %v1606_v41  ;;  %v1618_v34 = vand.u32 2147483648, %v1606_v41  ;;  %v1616_v52 = vand.u32 2147483647, %v1606_v41  ;;  %vm1612_vm14 = vweird.f32 %v1606_v41 }
0x1680   : > { %v1619_v57 = vor.u32 1.1754944e-38, %v1618_v34  ;;  %vm1617_vm2 = vcmp.eq.f32.partialorder %v1616_v52, 8.507059e+37 }
0x1684   : > { %v2193_v38 = vpop.eup %2192 }
0x1685   : > { %v1608_v17 = vmul.f32 %v2193_v38, %v1606_v41  ;;  %vm1613_vm13 = vweird.f32 %v2193_v38 }
0x1686   : > { %vm1614_vm15 = vmor %vm1612_vm14, %vm1613_vm13 }
0x1687   : > { %v1609_v43 = vsub.f32 1.0, %v1608_v17 }
0x1689   : > { %v1610_v49 = vmul.f32 %v2193_v38, %v1609_v43 }
0x168b   : > { %v1611_v53 = vadd.f32 %v2193_v38, %v1610_v49 }
0x168d   : > { %v1615_v60 = vsel %vm1614_vm15, %v2193_v38, %v1611_v53 }
0x168e   : > { %v1620_v46 = vsel %vm1617_vm2, %v1619_v57, %v1615_v60 }
0x168f   : > { %v1621_v50 = vmul.f32 %v2191_v0, %v1620_v46 }
0x1691   : > { %v1622_v35 = vadd.f32 1e-08, %v1621_v50  ;;  %1836 = vst.msk [vmem:[%s676_s14] sm:$0xf] %vm906_vm12, %v1621_v50 }
0x1693   : > { %v1623_v42 = vsel %vm906_vm12, %v1622_v35, 0.0 }
0x1694   : > { %1624 = vadd.xlane.f32.xlu1 %v1623_v42 }
0x1707   : > { %v1625_v40 = vpop.xlane.xlu1 %1624 }
0x1708   : > { %2194 = vrcp.f32 %v1625_v40  ;;  %v1637_v58 = vand.u32 2147483648, %v1625_v40  ;;  %v1635_v62 = vand.u32 2147483647, %v1625_v40  ;;  %vm1631_vm4 = vweird.f32 %v1625_v40 }
0x170a   : > { %v1638_v63 = vor.u32 1.1754944e-38, %v1637_v58  ;;  %vm1636_vm6 = vcmp.eq.f32.partialorder %v1635_v62, 8.507059e+37 }
0x170e   : > { %v2195_v48 = vpop.eup %2194 }
0x170f   : > { %v1627_v54 = vmul.f32 %v2195_v48, %v1625_v40  ;;  %vm1632_vm3 = vweird.f32 %v2195_v48 }
0x1710   : > { %vm1633_vm5 = vmor %vm1631_vm4, %vm1632_vm3 }
0x1711   : > { %v1628_v56 = vsub.f32 1.0, %v1627_v54 }
0x1713   : > { %v1629_v61 = vmul.f32 %v2195_v48, %v1628_v56 }
0x1715   : > { %v1630_v22 = vadd.f32 %v2195_v48, %v1629_v61 }
0x1717   : > { %v1634_v2 = vsel %vm1633_vm5, %v2195_v48, %v1630_v22 }
0x1718   : > { %v1639_v3 = vsel %vm1636_vm6, %v1638_v63, %v1634_v2 }
0x1719   : > { %v1640_v6 = vmul.f32 %v1639_v3, %v1622_v35 }
0x171b   : > { %2045 = vmatmul.msk.f32.vlgmr.msrb.gmra.mxu0 %vm964_vm7, %v1640_v6 }
0x1798   : > { %v1661_v7 = vpop.f32.mrf.mxu0 }
0x1799   : > { %2046 = vmatmul.msk.f32.vlgmr.msrb.gmra.mxu1 %vm730_vm0, %v1661_v7 }
0x1816   : > { %v1684_v9 = vpop.f32.mrf.mxu1 }
0x1817   : > { %v1685_v10 = vadd.f32 %v2932_v1, %v1684_v9  ;;  %v1731_v1 = vpop.permute.xlu0 %1730 }
0x1819   : > { %v1709_v15 = vadd.f32 %v1707_v23, %v1685_v10 }
0x181b   : > { %v2048_v26 = vmul.f32 -1.442695, %v1709_v15 }
0x181d   : > { %2196 = vpow2.f32 %v2048_v26 }
0x1823   : > { %v2197_v13 = vpop.eup %2196 }
0x1824   : > { %v1713_v18 = vadd.f32 1.0, %v2197_v13 }
0x1826   : > { %2198 = vrcp.f32 %v1713_v18  ;;  %v1725_v44 = vand.u32 2147483648, %v1713_v18  ;;  %v1723_v45 = vand.u32 2147483647, %v1713_v18  ;;  %vm1719_vm7 = vweird.f32 %v1713_v18 }
0x1828   : > { %v1726_v16 = vor.u32 1.1754944e-38, %v1725_v44  ;;  %vm1724_vm9 = vcmp.eq.f32.partialorder %v1723_v45, 8.507059e+37 }
0x182c   : > { %v2199_v19 = vpop.eup %2198 }
0x182d   : > { %v1715_v28 = vmul.f32 %v2199_v19, %v1713_v18  ;;  %vm1720_vm12 = vweird.f32 %v2199_v19 }
0x182e   : > { %vm1721_vm8 = vmor %vm1719_vm7, %vm1720_vm12 }
0x182f   : > { %v1716_v20 = vsub.f32 1.0, %v1715_v28 }
0x1831   : > { %v1717_v8 = vmul.f32 %v2199_v19, %v1716_v20 }
0x1833   : > { %v1718_v11 = vadd.f32 %v2199_v19, %v1717_v8 }
0x1835   : > { %v1722_v47 = vsel %vm1721_vm8, %v2199_v19, %v1718_v11 }
0x1836   : > { %v1727_v29 = vsel %vm1724_vm9, %v1726_v16, %v1722_v47 }
0x1837   : > { %v1733_v51 = vmul.f32 %v1731_v1, %v1727_v29  ;;  %v1740_v32 = vsub.f32 1.0, %v1727_v29  ;;  %v1746_v59 = vmul.f32 %v1727_v29, %v3062_v33 }
0x1839   : > { %1735 = vrot.lane.b32.xlu2 %v1733_v51, %s2413_s24 }
0x1893   : > { %v1736_v23 = vpop.permute.xlu2 %1735 }
0x1894   : > { %v1738_v30 = vadd.f32 %v1736_v23, %v1685_v10 }
0x1896   : > { %2200 = vtanh.f32 %v1738_v30 }
0x189c   : > { %v2201_v31 = vpop.eup %2200 }
0x189d   : > { %1742 = vrot.lane.b32.xlu0 %v2201_v31, %s3220_s23 }
0x190f   : > { %v1743_v55 = vpop.permute.xlu0 %1742 }
0x1910   : > { %v1745_v0 = vmul.f32 %v1743_v55, %v1740_v32 }
0x1912   : > { %v1747_v4 = vadd.f32 %v1746_v59, %v1745_v0 }
0x1914   : > { %1749 = vrot.lane.b32.xlu0 %v1747_v4, %s3220_s23 }
0x1986   : > { %v1750_v21 = vpop.permute.xlu0 %1749 }
0x1987   : > { %v1752_v24 = vsel %vm822_vm1, %v1750_v21, 0.0 }
0x1988   : > { %1753 = vadd.xlane.f32.xlu0 %v1752_v24 }
0x19fb   : > { %v1754_v25 = vpop.xlane.xlu0 %1753 }
0x19fc   : > { %v1755_v27 = vmul.f32 %v1754_v25, %v2636_v12 }
0x19fe   : > { %v1756_v39 = vsub.f32 %v1747_v4, %v1755_v27 }
0x1a00   : > { %v1757_v41 = vmul.f32 %v1756_v39, %v1756_v39 }
0x1a02   : > { %1759 = vrot.lane.b32.xlu1 %v1757_v41, %s3220_s23 }
0x1a74   : > { %v1760_v38 = vpop.permute.xlu1 %1759 }
0x1a75   : > { %v1762_v17 = vsel %vm822_vm1, %v1760_v38, 0.0 }
0x1a76   : > { %1763 = vadd.xlane.f32.xlu2 %v1762_v17 }
0x1ae9   : > { %v1764_v33 = vpop.xlane.xlu2 %1763 }
0x1aea   : > { %v1765_v43 = vmul.f32 %v1764_v33, %v2636_v12 }
0x1aec   : > { %v1766_v34 = vadd.f32 1e-05, %v1765_v43 }
0x1aee   : > { %2202 = vrsqrt.f32 %v1766_v34  ;;  %vm1773_vm11 = vweird.f32 %v1766_v34 }
0x1af4   : > { %v2203_v49 = vpop.eup %2202 }
0x1af5   : > { %v1768_v52 = vmul.f32 %v2203_v49, %v1766_v34  ;;  %vm1774_vm10 = vweird.f32 %v2203_v49 }
0x1af6   : > { %vm1775_vm13 = vmor %vm1773_vm11, %vm1774_vm10 }
0x1af7   : > { %v1769_v53 = vmul.f32 %v2203_v49, %v1768_v52 }
0x1af9   : > { %v1770_v57 = vmul.f32 0.5, %v1769_v53 }
0x1afb   : > { %v1771_v60 = vsub.f32 1.5, %v1770_v57 }
0x1afd   : > { %v1772_v46 = vmul.f32 %v2203_v49, %v1771_v60 }
0x1aff   : > { %v1776_v50 = vsel %vm1775_vm13, %v2203_v49, %v1772_v46 }
0x1b00   : > { %v1777_v35 = vmul.f32 %v1776_v50, %v1756_v39 }
0x1b02   : > { %v1778_v42 = vmul.f32 %v1777_v35, %v2951_v5 }
0x1b04   : > { %v1779_v40 = vadd.f32 %v1778_v42, %v2953_v14 }
0x1b06   : > { %1781 = vrot.lane.b32.xlu1 %v1779_v40, %s3220_s23  ;;  %s2318_s23 = scalar_lea.hbm %s2317_s20, 4 }
0x1b07   : > { %p2319_p1 = scmp.ne.s32.totalorder %s2317_s20, %s2318_s23  ;;  %p2324_p2 = scmp.lt.s32.totalorder %s2322_s1, %s2318_s23 }
0x1b09   : > { %p2320_p4 = pnand %p2319_p1, %p2583_p5  ;;  %p2325_p11 = por %p2324_p2, %p2323_p10 }
0x1b0b   : > { %p2321_p9 = pneg %p2320_p4 }
0x1b0d   : > { %p2326_p12 = pnand %p2325_p11, %p2321_p9 }
0x1b78   : > { %v1782_v12 = vpop.permute.xlu1 %1781 }
0x1b79   : > { %2049 = vmatmul.msk.f32.vlgmr.msra.gmra.mxu0 %vm730_vm0, %v1782_v12 }
0x1bf6   : > { %v1802_v48 = vpop.f32.mrf.mxu0 }
0x1bf7   : > { %v1803_v54 = vadd.f32 %v2966_v36, %v1802_v48 }
0x1bf9   : > { %v1805_v56 = vmax.f32 %v1803_v54, 0.0 }
0x1bfb   : > { %1822 = vmatmul.f32.vlgmr.msra.gmra.mxu1 %v1805_v56 }
0x1c78   : > { %v1823_v58 = vpop.f32.mrf.mxu1 }
0x1c79   : > { %v1824_v61 = vadd.f32 %v2974_v37, %v1823_v58 }
0x1c7b   : > { %1827 = vrot.lane.b32.xlu1 %v1824_v61, %s2412_s17 }
0x1c7c   : > { %2329 = shalt.err (!%p2326_p12)
}
0x1c7d   : > { %2068 = dma.vmem_to_hbm [thread:$0]  (%p2583_p5), %s1870_s18, 64, %s1872_s25, %s1843_s3  }
0x1c7e   : > { %s3252_s14 = smov 96   ;;  %s3253_s29 = sld [smem:[#allocation29_spill]] }
0x1c7f   : > { %s669_s5 = scalar_lea.vmem [#allocation8], %s2613_s22  ;;  %s1838_s1 = scalar_lea.sflag [#allocation4], %s2610_s26 }
0x1c80   : > { %s1855_s20 = sshll.u32 %s669_s5, 4  ;;  %s1856_s20 = int_to_ptr.vmem [resolvable:$true] %s1855_s20 }
0x1c84   : > { %s1853_s17 = scalar_lea.hbm %s3253_s29, %s2052_s19  ;;  %s2350_s19 = scalar_lea.hbm %s3253_s29, 8 }
0x1c85   : > { %s1857_s23 = sshll.u32 %s1853_s17, 4  ;;  %s1858_s23 = int_to_ptr.hbm [resolvable:$true] %s1857_s23 }
0x1c86   : > { %s2344_s27 = sshra.s32 %s1858_s23, 4  ;;  %s2345_s27 = int_to_ptr.hbm [resolvable:$true] %s2344_s27 }
0x1c87   : > { %s2346_s18 = scalar_lea.hbm %s2345_s27, 4  ;;  %p2351_p7 = scmp.lt.s32.totalorder %s2345_s27, %s3253_s29 }
0x1c88   : > { %p2347_p13 = scmp.ne.s32.totalorder %s2345_s27, %s2346_s18  ;;  %p2352_p8 = scmp.lt.s32.totalorder %s2350_s19, %s2346_s18 }
0x1c8a   : > { %p2348_p0 = pnand %p2347_p13, %p2583_p5  ;;  %p2353_p1 = por %p2352_p8, %p2351_p7 }
0x1c8c   : > { %p2349_p3 = pneg %p2348_p0 }
0x1c8e   : > { %p2354_p4 = pnand %p2353_p1, %p2349_p3 }
0x1ced   : > { %v1828_v5 = vpop.permute.xlu1 %1827 }
0x1cee   : > { %v1830_v14 = vadd.f32 %v1828_v5, %v1747_v4 }
0x1cf0   : > { %1832 = vrot.lane.b32.xlu0 %v1830_v14, %s3252_s14 }
0x1d62   : > { %v1833_v36 = vpop.permute.xlu0 %1832 }
0x1d63   : > { %1835 = vst.msk [vmem:[%s669_s5] sm:$0xf] %vm822_vm1, %v1833_v36 }
0x1d64   : > { %2357 = shalt.err (!%p2354_p4)
}
0x1d65   : > { %2067 = dma.vmem_to_hbm [thread:$0]  (%p2583_p5), %s1856_s20, 64, %s1858_s23, %s1838_s1  }
0x1d66 PF: > { %s3254_s26 = sld [smem:[#allocation15_spill]]  ;;  %p3256_p9 = scmp.ge.s32.totalorder %s2404_s21, 2 }
0x1d68   : > { %p2083_p10 = pnand %p3256_p9, %p2549_p6 }
0x1d6a   : > { %p2084_p2 = pneg %p2083_p10 }
0x1d6c   : > { %s1883_s0 = sand.u32 1, %s3254_s26  }
0x1d6d   : > { %s1884_s17 = scalar_lea.sflag [#allocation4], %s1883_s0 }
0x1d6e   : > { %2383 = dma.done.wait (%p2084_p2), %s1884_s17, 64  }
0x1d6f   : > { %2385 = vsyncadd (%p2084_p2), %s1884_s17, 4294967232  ;;  %s1894_s5 = scalar_lea.sflag [#allocation10], %s1883_s0 }
0x1d70   : > { %2387 = dma.done.wait (%p2084_p2), %s1894_s5, 64  }
0x1d71   : > { %2389 = vsyncadd (%p2084_p2), %s1894_s5, 4294967232  ;;  %s3257_s21 = sld [smem:[#allocation18_spill]]  ;;  %s3260_s0 = smov %s2396_s30 }
0x1d72   : > { %s3258_s27 = sld [smem:[#allocation16_spill]] }
0x1d73   : > { %s3259_s20 = sld [smem:[#allocation19_spill]] }
0x1d77   : > { %p37_p5 = scmp.ge.s32.totalorder %s3257_s21, 4  }
0x1d78   : > { %s3261_s30 = smov %s3258_s27 }
0x1d79   :  { %39 = sbr.rel (!%p37_p5) target bundleno = 19 (0x13), region = 165 }
0x1d7e   :  { %1900 = vsyncpa [#allocation3], 1 }
0x1d7f   :  { %1902 = vsyncpa [#allocation3 + $0x1], 1 }
0x1d80   :  { %1903 = vsyncpa [#allocation6], 1 }
0x1d81   :  { %1904 = vsyncpa [#allocation4], 1 }
0x1d82   :  { %1906 = vsyncpa [#allocation4 + $0x1], 1 }
0x1d83   :  { %1907 = vsyncpa [#allocation10], 1 }
0x1d84   :  { %1909 = vsyncpa [#allocation10 + $0x1], 1 }

</bundles_post_ra>
